<compile_context>
chip_gen: v7x
topology: tpu7x:2x2x1
jax: 0.10.0
libtpu: 0.0.40
codegen_flags: <defaults>
</compile_context>

<pallas_src>
import math
import functools

import jax
import jax.numpy as jnp
from jax.experimental import pallas as pl
from jax.experimental.pallas import tpu as pltpu


# rows of the packed (13, D) vector array
_SBQ, _SBK, _SBV, _SBO = 0, 1, 2, 3          # self-attn biases
_CBQ, _CBK, _CBV, _CBO = 4, 5, 6, 7          # cross-attn biases
_B2 = 8                                      # FFN output bias
_G0, _BE0, _G1, _BE1 = 9, 10, 11, 12         # LayerNorm params


def _row(vecs, i):
    """(1, D) row slice of the packed vector array (kept 2-D for clean TPU layout)."""
    return vecs[i:i + 1, :]


# ----------------------------- in-kernel helpers -----------------------------

def _layernorm(x, gamma, beta, eps=1e-6):
    # tutorial-style LayerNormalization: unbiased std (ddof=1), eps added to std.
    # Exact divide on the normalization path (review correctness note); the approx
    # EUP reciprocal is only used for the softmax denominator.
    d = x.shape[-1]
    mean = jnp.mean(x, axis=-1, keepdims=True)
    var = jnp.sum((x - mean) ** 2, axis=-1, keepdims=True) * (1.0 / (d - 1))
    inv = 1.0 / (jnp.sqrt(var) + eps)
    return gamma * (x - mean) * inv + beta


def _attention_core(q, k, v, mask_zero, n_heads):
    """Scaled dot-product attention on a chunk of Bt batch elements.

    q: (Bt, Sq, D) f32, k/v: (Bt, Skv, D) f32, mask_zero: (Bt, Sq, Skv) bool
    (True where the score must be replaced by -1e9 -> exact masked_fill semantics).
    Returns the concatenated head outputs (Bt, Sq, D) f32 (pre output-projection).
    """
    bt, sq, d = q.shape
    skv = k.shape[1]
    dk = d // n_heads
    scale = 1.0 / math.sqrt(dk)

    # cast once; bf16 MXU operands with f32 accumulation
    qb = q.astype(jnp.bfloat16)
    kb = k.astype(jnp.bfloat16)
    vb = v.astype(jnp.bfloat16)

    heads = []
    for h in range(n_heads):                      # static unroll over heads
        sl = slice(h * dk, (h + 1) * dk)
        s = jnp.einsum('bqd,bkd->bqk', qb[:, :, sl], kb[:, :, sl],
                       preferred_element_type=jnp.float32) * scale
        s = jnp.where(mask_zero, -1e9, s)         # exact masked_fill(mask==0, -1e9)
        s = s - jnp.max(s, axis=-1, keepdims=True)
        p = jnp.exp(s)
        p = p * pl.reciprocal(jnp.sum(p, axis=-1, keepdims=True), approx=True)
        heads.append(jnp.einsum('bqk,bkd->bqd', p.astype(jnp.bfloat16), vb[:, :, sl],
                                preferred_element_type=jnp.float32))
    # in-register concat along lanes (no VMEM scratch round-trip / masked stores)
    return jnp.concatenate(heads, axis=-1)        # (Bt, Sq, D) f32


# --------------------------------- the kernel --------------------------------

def decoder_block_kernel(
    x_ref, enc_ref, dec_mask_ref, enc_mask_ref,
    w_sqkv, w_so,                 # self-attn: fused (D,3D) qkv weight, (D,D) out weight
    w_cq, w_ckv, w_co,            # cross-attn: (D,D) q, fused (D,2D) kv, (D,D) out
    w1, w2,                       # FFN weights (D,d_ff), (d_ff,D)
    vecs_ref,                     # (13, D) f32: packed biases + LayerNorm params
    b1_ref,                       # (1, d_ff) f32 FFN hidden bias
    out_ref,
    *, n_heads):
    bt, s_dec, d = x_ref.shape
    s_enc = enc_ref.shape[1]
    rows = bt * s_dec

    vecs = vecs_ref[...]                                        # (13, D) f32
    x = x_ref[...].astype(jnp.float32).reshape(rows, d)         # (Bt*S_dec, D)
    enc = enc_ref[...].astype(jnp.float32)                      # (Bt, S_enc, D)

    # mask -> boolean "fill here" tensors, computed / broadcast ONCE (hoisted)
    dec_zero = dec_mask_ref[...] == 0.0                         # (Bt, S_dec, S_dec)
    enc_zero = jnp.broadcast_to(enc_mask_ref[...] == 0.0,
                                (bt, s_dec, s_enc))             # (Bt, S_dec, S_enc)

    # ---------------- residual 0: self-attention (dropout == identity) ---------------
    xn = _layernorm(x, _row(vecs, _G0), _row(vecs, _BE0))
    xn_b = xn.astype(jnp.bfloat16)                              # cast once, reuse
    qkv = jnp.dot(xn_b, w_sqkv[...], preferred_element_type=jnp.float32)   # (R, 3D)
    q = (qkv[:, 0 * d:1 * d] + _row(vecs, _SBQ)).reshape(bt, s_dec, d)
    k = (qkv[:, 1 * d:2 * d] + _row(vecs, _SBK)).reshape(bt, s_dec, d)
    v = (qkv[:, 2 * d:3 * d] + _row(vecs, _SBV)).reshape(bt, s_dec, d)
    attn = _attention_core(q, k, v, dec_zero, n_heads).reshape(rows, d)
    x = x + (jnp.dot(attn.astype(jnp.bfloat16), w_so[...],
                     preferred_element_type=jnp.float32) + _row(vecs, _SBO))

    # ---------------- residual 1: cross-attention (k, v from encoder output) ----------
    xn = _layernorm(x, _row(vecs, _G1), _row(vecs, _BE1))
    xn_b = xn.astype(jnp.bfloat16)
    cq = (jnp.dot(xn_b, w_cq[...], preferred_element_type=jnp.float32)
          + _row(vecs, _CBQ)).reshape(bt, s_dec, d)
    enc_b = enc.reshape(bt * s_enc, d).astype(jnp.bfloat16)
    ckv = jnp.dot(enc_b, w_ckv[...], preferred_element_type=jnp.float32)   # (Bt*S_enc, 2D)
    ck = (ckv[:, 0 * d:1 * d] + _row(vecs, _CBK)).reshape(bt, s_enc, d)
    cv = (ckv[:, 1 * d:2 * d] + _row(vecs, _CBV)).reshape(bt, s_enc, d)
    attn = _attention_core(cq, ck, cv, enc_zero, n_heads).reshape(rows, d)
    x = x + (jnp.dot(attn.astype(jnp.bfloat16), w_co[...],
                     preferred_element_type=jnp.float32) + _row(vecs, _CBO))

    # ---------------- residual "2": FFN (reference reuses res_connection[1] -> g1/be1) -
    xn = _layernorm(x, _row(vecs, _G1), _row(vecs, _BE1))
    h = jnp.dot(xn.astype(jnp.bfloat16), w1[...],
                preferred_element_type=jnp.float32) + b1_ref[...]
    h = jnp.maximum(h, 0.0)
    x = x + (jnp.dot(h.astype(jnp.bfloat16), w2[...],
                     preferred_element_type=jnp.float32) + _row(vecs, _B2))

    out_ref[...] = x.reshape(bt, s_dec, d).astype(out_ref.dtype)


# --------------------------------- the wrapper --------------------------------

def _pick_batch_tile(batch, seq):
    """Largest divisor of `batch` with Bt*seq <= 2048, stopping once >= ~256 rows
    (fills the 256-wide MXU on v6e/v7x and amortizes the ~0.35us per-step cost)."""
    target = max(1, (256 + seq - 1) // seq)
    best = 1
    for d in range(1, batch + 1):
        if batch % d == 0 and d * seq <= 2048:
            best = d
            if d >= target:
                break
    return best


def _estimate_vmem_bytes(bt, s_dec, s_enc, d, d_ff):
    f32, b16 = 4, 2
    tensor_blocks = (bt * s_dec * d            # x
                     + bt * s_enc * d          # encoder output
                     + bt * s_dec * s_dec      # decoder mask
                     + bt * s_enc              # encoder mask
                     + bt * s_dec * d) * f32   # output
    weight_blocks = ((3 * d * d) + 3 * (d * d) + (2 * d * d)
                     + d * d_ff + d_ff * d) * b16 + (13 * d + d_ff) * f32
    # in-kernel intermediates: fused qkv, scores, FFN hidden, residual copies
    interm = (bt * s_dec * 3 * d + bt * s_dec * max(s_dec, s_enc)
              + bt * s_dec * d_ff + 4 * bt * s_dec * d) * f32
    est = 2 * (tensor_blocks + weight_blocks) + 2 * interm + (4 << 20)
    return max(32 << 20, min(int(est), 96 << 20))


def decoder_block(x, encoder_output, encoder_mask, decoder_mask, params, n_heads):
    B, S_dec, D = x.shape
    S_enc = encoder_output.shape[1]

    (swq, swk, swv, swo, sbq, sbk, sbv, sbo,
     cwq, cwk, cwv, cwo, cbq, cbk, cbv, cbo,
     w1, b1, w2, b2, g0, be0, g1, be1) = params
    d_ff = w1.shape[1]

    bf16 = jnp.bfloat16
    # fused / bf16 weight matrices (halve DMA & VMEM bytes, lane-dense N, fewer DMAs)
    w_sqkv = jnp.concatenate([swq, swk, swv], axis=1).astype(bf16)   # (D, 3D)
    w_so = swo.astype(bf16)
    w_cq = cwq.astype(bf16)
    w_ckv = jnp.concatenate([cwk, cwv], axis=1).astype(bf16)         # (D, 2D)
    w_co = cwo.astype(bf16)
    w1b = w1.astype(bf16)
    w2b = w2.astype(bf16)
    # all (1, D) biases + LayerNorm params packed into ONE array (one DMA, not 13)
    vecs = jnp.concatenate([sbq, sbk, sbv, sbo, cbq, cbk, cbv, cbo,
                            b2, g0, be0, g1, be1], axis=0).astype(jnp.float32)
    b1f = b1.astype(jnp.float32)

    weights = [w_sqkv, w_so, w_cq, w_ckv, w_co, w1b, w2b, vecs, b1f]

    Bt = _pick_batch_tile(B, S_dec)
    grid = (B // Bt,)

    def batch_spec(shape):
        return pl.BlockSpec((Bt,) + shape, lambda b: (b, 0, 0))

    def full_spec(arr):
        n = arr.ndim
        return pl.BlockSpec(arr.shape, lambda b, n=n: (0,) * n)

    in_specs = [
        batch_spec((S_dec, D)),          # x
        batch_spec((S_enc, D)),          # encoder output
        batch_spec((S_dec, S_dec)),      # decoder mask
        batch_spec((1, S_enc)),          # encoder mask
    ] + [full_spec(w) for w in weights]

    out_specs = pl.BlockSpec((Bt, S_dec, D), lambda b: (b, 0, 0))

    kernel = functools.partial(decoder_block_kernel, n_heads=n_heads)

    return pl.pallas_call(
        kernel,
        out_shape=jax.ShapeDtypeStruct((B, S_dec, D), jnp.float32),
        grid_spec=pltpu.PrefetchScalarGridSpec(
            num_scalar_prefetch=0,
            grid=grid,
            in_specs=in_specs,
            out_specs=out_specs,
        ),
        compiler_params=pltpu.CompilerParams(
            dimension_semantics=("parallel",),
            vmem_limit_bytes=_estimate_vmem_bytes(Bt, S_dec, S_enc, D, d_ff),
        ),
    )(x, encoder_output, decoder_mask, encoder_mask, *weights)


# ------------------------------ parameter init --------------------------------

def init_params(key, d_model, d_ff):
    keys = iter(jax.random.split(key, 32))

    def nrm(shape, scale=0.02):
        return (scale * jax.random.normal(next(keys), shape)).astype(jnp.float32)

    params = []
    for _ in range(2):                                   # self-attn, cross-attn
        params += [nrm((d_model, d_model)) for _ in range(4)]   # Wq Wk Wv Wo
        params += [nrm((1, d_model), 0.01) for _ in range(4)]   # bq bk bv bo
    params += [nrm((d_model, d_ff)), nrm((1, d_ff), 0.01),      # FFN
               nrm((d_ff, d_model)), nrm((1, d_model), 0.01)]
    params += [1.0 + nrm((1, d_model), 0.01), nrm((1, d_model), 0.01),  # g0, be0
               1.0 + nrm((1, d_model), 0.01), nrm((1, d_model), 0.01)]  # g1, be1
    return params


# ------------------------------ pure-JAX reference -----------------------------

def _ref_ln(x, g, b, eps=1e-6):
    d = x.shape[-1]
    m = x.mean(-1, keepdims=True)
    var = ((x - m) ** 2).sum(-1, keepdims=True) / (d - 1)
    return g * (x - m) / (jnp.sqrt(var) + eps) + b


def _ref_mha(xq, xkv, wq, bq, wk, bk, wv, bv, wo, bo, mask, n_heads):
    B, Sq, D = xq.shape
    Skv = xkv.shape[1]
    dk = D // n_heads
    q = (xq @ wq + bq).reshape(B, Sq, n_heads, dk).transpose(0, 2, 1, 3)
    k = (xkv @ wk + bk).reshape(B, Skv, n_heads, dk).transpose(0, 2, 1, 3)
    v = (xkv @ wv + bv).reshape(B, Skv, n_heads, dk).transpose(0, 2, 1, 3)
    s = jnp.einsum('bhqd,bhkd->bhqk', q, k) / math.sqrt(dk)
    s = jnp.where(mask[:, None] == 0.0, -1e9, s)
    p = jax.nn.softmax(s, axis=-1)
    o = jnp.einsum('bhqk,bhkd->bhqd', p, v).transpose(0, 2, 1, 3).reshape(B, Sq, D)
    return o @ wo + bo


def decoder_block_ref(x, enc, enc_mask, dec_mask, params, n_heads):
    (swq, swk, swv, swo, sbq, sbk, sbv, sbo,
     cwq, cwk, cwv, cwo, cbq, cbk, cbv, cbo,
     w1, b1, w2, b2, g0, be0, g1, be1) = params
    xn = _ref_ln(x, g0, be0)
    x = x + _ref_mha(xn, xn, swq, sbq, swk, sbk, swv, sbv, swo, sbo, dec_mask, n_heads)
    xn = _ref_ln(x, g1, be1)
    x = x + _ref_mha(xn, enc, cwq, cbq, cwk, cbk, cwv, cbv, cwo, cbo, enc_mask, n_heads)
    xn = _ref_ln(x, g1, be1)
    x = x + jnp.maximum(xn @ w1 + b1, 0.0) @ w2 + b2
    return x


# ----------------------------------- main --------------------------------------

if __name__ == "__main__":
    B, S_DEC, S_ENC, D, D_FF, H = 2, 8, 8, 32, 64, 4

    key = jax.random.PRNGKey(0)
    k_x, k_enc, k_p = jax.random.split(key, 3)

    x = jax.random.normal(k_x, (B, S_DEC, D), dtype=jnp.float32)
    encoder_output = jax.random.normal(k_enc, (B, S_ENC, D), dtype=jnp.float32)

    # causal decoder mask; encoder mask with a couple of padded positions on batch 1
    decoder_mask = jnp.broadcast_to(
        jnp.tril(jnp.ones((S_DEC, S_DEC), jnp.float32)), (B, S_DEC, S_DEC))
    encoder_mask = jnp.ones((B, 1, S_ENC), jnp.float32)
    encoder_mask = encoder_mask.at[1, 0, S_ENC - 2:].set(0.0)

    params = init_params(k_p, D, D_FF)

    out = decoder_block(x, encoder_output, encoder_mask, decoder_mask, params, H)
    out = jax.block_until_ready(out)

    ref = decoder_block_ref(x, encoder_output, encoder_mask, decoder_mask, params, H)
    assert out.shape == (B, S_DEC, D)
    # bf16 MXU operands + approx softmax reciprocal -> looser tolerance than pure f32
    assert jnp.allclose(out, ref, atol=3e-2, rtol=3e-2), \
        f"max abs err = {jnp.max(jnp.abs(out - ref))}"

    print("KERNEL_OK")
</pallas_src>

<mosaic_0001>
module attributes {stable_mosaic.version = 11 : i64} {
  func.func @decoder_block_kernel(%arg0: i32, %arg1: memref<2x8x32xf32, #tpu.memory_space<vmem>>, %arg2: memref<2x8x32xf32, #tpu.memory_space<vmem>>, %arg3: memref<2x8x8xf32, #tpu.memory_space<vmem>>, %arg4: memref<2x1x8xf32, #tpu.memory_space<vmem>>, %arg5: memref<32x96xbf16, #tpu.memory_space<vmem>>, %arg6: memref<32x32xbf16, #tpu.memory_space<vmem>>, %arg7: memref<32x32xbf16, #tpu.memory_space<vmem>>, %arg8: memref<32x64xbf16, #tpu.memory_space<vmem>>, %arg9: memref<32x32xbf16, #tpu.memory_space<vmem>>, %arg10: memref<32x64xbf16, #tpu.memory_space<vmem>>, %arg11: memref<64x32xbf16, #tpu.memory_space<vmem>>, %arg12: memref<13x32xf32, #tpu.memory_space<vmem>>, %arg13: memref<1x64xf32, #tpu.memory_space<vmem>>, %arg14: memref<2x8x32xf32, #tpu.memory_space<vmem>>) attributes {dimension_semantics = [#tpu.dimension_semantics<parallel>], iteration_bounds = array<i64: 1>, scalar_prefetch = 0 : i64, scratch_operands = 0 : i64, tpu.core_type = #tpu.core_type<tc>, window_params = [{transform_indices = @transform_0, window_bounds = array<i64: 2, 8, 32>}, {transform_indices = @transform_1, window_bounds = array<i64: 2, 8, 32>}, {transform_indices = @transform_2, window_bounds = array<i64: 2, 8, 8>}, {transform_indices = @transform_3, window_bounds = array<i64: 2, 1, 8>}, {pipeline_mode = #tpu.pipeline_mode<synchronous>, transform_indices = @transform_4, window_bounds = array<i64: 32, 96>}, {pipeline_mode = #tpu.pipeline_mode<synchronous>, transform_indices = @transform_5, window_bounds = array<i64: 32, 32>}, {pipeline_mode = #tpu.pipeline_mode<synchronous>, transform_indices = @transform_6, window_bounds = array<i64: 32, 32>}, {pipeline_mode = #tpu.pipeline_mode<synchronous>, transform_indices = @transform_7, window_bounds = array<i64: 32, 64>}, {pipeline_mode = #tpu.pipeline_mode<synchronous>, transform_indices = @transform_8, window_bounds = array<i64: 32, 32>}, {pipeline_mode = #tpu.pipeline_mode<synchronous>, transform_indices = @transform_9, window_bounds = array<i64: 32, 64>}, {pipeline_mode = #tpu.pipeline_mode<synchronous>, transform_indices = @transform_10, window_bounds = array<i64: 64, 32>}, {pipeline_mode = #tpu.pipeline_mode<synchronous>, transform_indices = @transform_11, window_bounds = array<i64: 13, 32>}, {pipeline_mode = #tpu.pipeline_mode<synchronous>, transform_indices = @transform_12, window_bounds = array<i64: 1, 64>}, {transform_indices = @transform_13, window_bounds = array<i64: 2, 8, 32>}]} {
    %c0 = arith.constant 0 : index
    %c0_0 = arith.constant 0 : index
    %0 = vector.load %arg12[%c0, %c0_0] : memref<13x32xf32, #tpu.memory_space<vmem>>, vector<13x32xf32>
    %c0_1 = arith.constant 0 : index
    %c0_2 = arith.constant 0 : index
    %c0_3 = arith.constant 0 : index
    %1 = vector.load %arg1[%c0_1, %c0_2, %c0_3] : memref<2x8x32xf32, #tpu.memory_space<vmem>>, vector<2x8x32xf32>
    %2 = vector.shape_cast %1 : vector<2x8x32xf32> to vector<16x32xf32>
    %c0_4 = arith.constant 0 : index
    %c0_5 = arith.constant 0 : index
    %c0_6 = arith.constant 0 : index
    %3 = vector.load %arg2[%c0_4, %c0_5, %c0_6] : memref<2x8x32xf32, #tpu.memory_space<vmem>>, vector<2x8x32xf32>
    %c0_7 = arith.constant 0 : index
    %c0_8 = arith.constant 0 : index
    %c0_9 = arith.constant 0 : index
    %4 = vector.load %arg3[%c0_7, %c0_8, %c0_9] : memref<2x8x8xf32, #tpu.memory_space<vmem>>, vector<2x8x8xf32>
    %cst = arith.constant 0.000000e+00 : f32
    %5 = vector.broadcast %cst : f32 to vector<2x8x8xf32>
    %6 = arith.cmpf oeq, %4, %5 : vector<2x8x8xf32>
    %c0_10 = arith.constant 0 : index
    %c0_11 = arith.constant 0 : index
    %c0_12 = arith.constant 0 : index
    %7 = vector.load %arg4[%c0_10, %c0_11, %c0_12] : memref<2x1x8xf32, #tpu.memory_space<vmem>>, vector<2x1x8xf32>
    %cst_13 = arith.constant 0.000000e+00 : f32
    %8 = vector.broadcast %cst_13 : f32 to vector<2x1x8xf32>
    %9 = arith.cmpf oeq, %7, %8 : vector<2x1x8xf32>
    %10 = vector.shape_cast %9 : vector<2x1x8xi1> to vector<2x1x8xi1>
    %11 = vector.broadcast %10 : vector<2x1x8xi1> to vector<2x8x8xi1>
    %12 = vector.extract_strided_slice %0 {offsets = [9, 0], sizes = [1, 32], strides = [1, 1]} : vector<13x32xf32> to vector<1x32xf32>
    %13 = vector.extract_strided_slice %0 {offsets = [10, 0], sizes = [1, 32], strides = [1, 1]} : vector<13x32xf32> to vector<1x32xf32>
    %cst_14 = arith.constant dense<0.000000e+00> : vector<16xf32>
    %14 = vector.multi_reduction <add>, %2, %cst_14 [1] : vector<16x32xf32> to vector<16xf32>
    %15 = vector.shape_cast %14 : vector<16xf32> to vector<16x1xf32>
    %cst_15 = arith.constant 3.200000e+01 : f32
    %16 = vector.broadcast %cst_15 : f32 to vector<16x1xf32>
    %17 = arith.divf %15, %16 : vector<16x1xf32>
    %18 = vector.broadcast %17 : vector<16x1xf32> to vector<16x32xf32>
    %19 = arith.subf %2, %18 : vector<16x32xf32>
    %20 = arith.mulf %19, %19 : vector<16x32xf32>
    %cst_16 = arith.constant dense<0.000000e+00> : vector<16xf32>
    %21 = vector.multi_reduction <add>, %20, %cst_16 [1] : vector<16x32xf32> to vector<16xf32>
    %22 = vector.shape_cast %21 : vector<16xf32> to vector<16x1xf32>
    %cst_17 = arith.constant 0.0322580636 : f32
    %23 = vector.broadcast %cst_17 : f32 to vector<16x1xf32>
    %24 = arith.mulf %22, %23 : vector<16x1xf32>
    %25 = math.sqrt %24 : vector<16x1xf32>
    %cst_18 = arith.constant 9.99999997E-7 : f32
    %26 = vector.broadcast %cst_18 : f32 to vector<16x1xf32>
    %27 = arith.addf %25, %26 : vector<16x1xf32>
    %cst_19 = arith.constant 1.000000e+00 : f32
    %28 = vector.broadcast %cst_19 : f32 to vector<16x1xf32>
    %29 = arith.divf %28, %27 : vector<16x1xf32>
    %30 = vector.broadcast %17 : vector<16x1xf32> to vector<16x32xf32>
    %31 = arith.subf %2, %30 : vector<16x32xf32>
    %32 = vector.broadcast %12 : vector<1x32xf32> to vector<16x32xf32>
    %33 = arith.mulf %32, %31 : vector<16x32xf32>
    %34 = vector.broadcast %29 : vector<16x1xf32> to vector<16x32xf32>
    %35 = arith.mulf %33, %34 : vector<16x32xf32>
    %36 = vector.broadcast %13 : vector<1x32xf32> to vector<16x32xf32>
    %37 = arith.addf %35, %36 : vector<16x32xf32>
    %38 = arith.truncf %37 : vector<16x32xf32> to vector<16x32xbf16>
    %c0_20 = arith.constant 0 : index
    %c0_21 = arith.constant 0 : index
    %39 = vector.load %arg5[%c0_20, %c0_21] : memref<32x96xbf16, #tpu.memory_space<vmem>>, vector<32x96xbf16>
    %cst_22 = arith.constant dense<0.000000e+00> : vector<16x96xf32>
    %40 = tpu.matmul %38, %39, %cst_22 {dimension_numbers = #tpu.dot_dimension_numbers<[1], [0], [0], [1], [0, 0, 1, 1], [], []>} : vector<16x32xbf16>, vector<32x96xbf16>, vector<16x96xf32> -> vector<16x96xf32>
    %41 = vector.extract_strided_slice %40 {offsets = [0, 0], sizes = [16, 32], strides = [1, 1]} : vector<16x96xf32> to vector<16x32xf32>
    %42 = vector.extract_strided_slice %0 {offsets = [0, 0], sizes = [1, 32], strides = [1, 1]} : vector<13x32xf32> to vector<1x32xf32>
    %43 = vector.broadcast %42 : vector<1x32xf32> to vector<16x32xf32>
    %44 = arith.addf %41, %43 : vector<16x32xf32>
    %45 = vector.shape_cast %44 : vector<16x32xf32> to vector<2x8x32xf32>
    %46 = vector.extract_strided_slice %40 {offsets = [0, 32], sizes = [16, 32], strides = [1, 1]} : vector<16x96xf32> to vector<16x32xf32>
    %47 = vector.extract_strided_slice %0 {offsets = [1, 0], sizes = [1, 32], strides = [1, 1]} : vector<13x32xf32> to vector<1x32xf32>
    %48 = vector.broadcast %47 : vector<1x32xf32> to vector<16x32xf32>
    %49 = arith.addf %46, %48 : vector<16x32xf32>
    %50 = vector.shape_cast %49 : vector<16x32xf32> to vector<2x8x32xf32>
    %51 = vector.extract_strided_slice %40 {offsets = [0, 64], sizes = [16, 32], strides = [1, 1]} : vector<16x96xf32> to vector<16x32xf32>
    %52 = vector.extract_strided_slice %0 {offsets = [2, 0], sizes = [1, 32], strides = [1, 1]} : vector<13x32xf32> to vector<1x32xf32>
    %53 = vector.broadcast %52 : vector<1x32xf32> to vector<16x32xf32>
    %54 = arith.addf %51, %53 : vector<16x32xf32>
    %55 = vector.shape_cast %54 : vector<16x32xf32> to vector<2x8x32xf32>
    %56 = arith.truncf %45 : vector<2x8x32xf32> to vector<2x8x32xbf16>
    %57 = arith.truncf %50 : vector<2x8x32xf32> to vector<2x8x32xbf16>
    %58 = arith.truncf %55 : vector<2x8x32xf32> to vector<2x8x32xbf16>
    %59 = vector.extract_strided_slice %56 {offsets = [0, 0, 0], sizes = [2, 8, 8], strides = [1, 1, 1]} : vector<2x8x32xbf16> to vector<2x8x8xbf16>
    %60 = vector.extract_strided_slice %57 {offsets = [0, 0, 0], sizes = [2, 8, 8], strides = [1, 1, 1]} : vector<2x8x32xbf16> to vector<2x8x8xbf16>
    "tpu.trace_start"() <{level = 10 : i32, message = "bqd,bkd->bqk"}> : () -> ()
    %cst_23 = arith.constant dense<0.000000e+00> : vector<2x8x8xf32>
    %61 = tpu.matmul %59, %60, %cst_23 {dimension_numbers = #tpu.dot_dimension_numbers<[2], [2], [1], [1], [0, 0, 0, 1, 1, 1], [0], [0]>} : vector<2x8x8xbf16>, vector<2x8x8xbf16>, vector<2x8x8xf32> -> vector<2x8x8xf32>
    "tpu.trace_stop"() : () -> ()
    %cst_24 = arith.constant 0.353553385 : f32
    %62 = vector.broadcast %cst_24 : f32 to vector<2x8x8xf32>
    %63 = arith.mulf %61, %62 : vector<2x8x8xf32>
    %cst_25 = arith.constant -1.000000e+09 : f32
    %64 = vector.broadcast %cst_25 : f32 to vector<2x8x8xf32>
    %65 = arith.select %6, %64, %63 : vector<2x8x8xi1>, vector<2x8x8xf32>
    %cst_26 = arith.constant dense<0xFF800000> : vector<2x8xf32>
    %66 = vector.multi_reduction <maximumf>, %65, %cst_26 [2] : vector<2x8x8xf32> to vector<2x8xf32>
    %67 = vector.shape_cast %66 : vector<2x8xf32> to vector<2x8x1xf32>
    %68 = vector.broadcast %67 : vector<2x8x1xf32> to vector<2x8x8xf32>
    %69 = arith.subf %65, %68 : vector<2x8x8xf32>
    %70 = math.exp %69 : vector<2x8x8xf32>
    %cst_27 = arith.constant dense<0.000000e+00> : vector<2x8xf32>
    %71 = vector.multi_reduction <add>, %70, %cst_27 [2] : vector<2x8x8xf32> to vector<2x8xf32>
    %72 = vector.shape_cast %71 : vector<2x8xf32> to vector<2x8x1xf32>
    %73 = tpu.reciprocal %72 {approx = true} : vector<2x8x1xf32> -> vector<2x8x1xf32>
    %74 = vector.broadcast %73 : vector<2x8x1xf32> to vector<2x8x8xf32>
    %75 = arith.mulf %70, %74 : vector<2x8x8xf32>
    %76 = arith.truncf %75 : vector<2x8x8xf32> to vector<2x8x8xbf16>
    %77 = vector.extract_strided_slice %58 {offsets = [0, 0, 0], sizes = [2, 8, 8], strides = [1, 1, 1]} : vector<2x8x32xbf16> to vector<2x8x8xbf16>
    "tpu.trace_start"() <{level = 10 : i32, message = "bqk,bkd->bqd"}> : () -> ()
    %cst_28 = arith.constant dense<0.000000e+00> : vector<2x8x8xf32>
    %78 = tpu.matmul %76, %77, %cst_28 {dimension_numbers = #tpu.dot_dimension_numbers<[2], [1], [1], [2], [0, 0, 0, 1, 1, 2], [0], [0]>} : vector<2x8x8xbf16>, vector<2x8x8xbf16>, vector<2x8x8xf32> -> vector<2x8x8xf32>
    "tpu.trace_stop"() : () -> ()
    %79 = vector.extract_strided_slice %56 {offsets = [0, 0, 8], sizes = [2, 8, 8], strides = [1, 1, 1]} : vector<2x8x32xbf16> to vector<2x8x8xbf16>
    %80 = vector.extract_strided_slice %57 {offsets = [0, 0, 8], sizes = [2, 8, 8], strides = [1, 1, 1]} : vector<2x8x32xbf16> to vector<2x8x8xbf16>
    "tpu.trace_start"() <{level = 10 : i32, message = "bqd,bkd->bqk"}> : () -> ()
    %cst_29 = arith.constant dense<0.000000e+00> : vector<2x8x8xf32>
    %81 = tpu.matmul %79, %80, %cst_29 {dimension_numbers = #tpu.dot_dimension_numbers<[2], [2], [1], [1], [0, 0, 0, 1, 1, 1], [0], [0]>} : vector<2x8x8xbf16>, vector<2x8x8xbf16>, vector<2x8x8xf32> -> vector<2x8x8xf32>
    "tpu.trace_stop"() : () -> ()
    %cst_30 = arith.constant 0.353553385 : f32
    %82 = vector.broadcast %cst_30 : f32 to vector<2x8x8xf32>
    %83 = arith.mulf %81, %82 : vector<2x8x8xf32>
    %cst_31 = arith.constant -1.000000e+09 : f32
    %84 = vector.broadcast %cst_31 : f32 to vector<2x8x8xf32>
    %85 = arith.select %6, %84, %83 : vector<2x8x8xi1>, vector<2x8x8xf32>
    %cst_32 = arith.constant dense<0xFF800000> : vector<2x8xf32>
    %86 = vector.multi_reduction <maximumf>, %85, %cst_32 [2] : vector<2x8x8xf32> to vector<2x8xf32>
    %87 = vector.shape_cast %86 : vector<2x8xf32> to vector<2x8x1xf32>
    %88 = vector.broadcast %87 : vector<2x8x1xf32> to vector<2x8x8xf32>
    %89 = arith.subf %85, %88 : vector<2x8x8xf32>
    %90 = math.exp %89 : vector<2x8x8xf32>
    %cst_33 = arith.constant dense<0.000000e+00> : vector<2x8xf32>
    %91 = vector.multi_reduction <add>, %90, %cst_33 [2] : vector<2x8x8xf32> to vector<2x8xf32>
    %92 = vector.shape_cast %91 : vector<2x8xf32> to vector<2x8x1xf32>
    %93 = tpu.reciprocal %92 {approx = true} : vector<2x8x1xf32> -> vector<2x8x1xf32>
    %94 = vector.broadcast %93 : vector<2x8x1xf32> to vector<2x8x8xf32>
    %95 = arith.mulf %90, %94 : vector<2x8x8xf32>
    %96 = arith.truncf %95 : vector<2x8x8xf32> to vector<2x8x8xbf16>
    %97 = vector.extract_strided_slice %58 {offsets = [0, 0, 8], sizes = [2, 8, 8], strides = [1, 1, 1]} : vector<2x8x32xbf16> to vector<2x8x8xbf16>
    "tpu.trace_start"() <{level = 10 : i32, message = "bqk,bkd->bqd"}> : () -> ()
    %cst_34 = arith.constant dense<0.000000e+00> : vector<2x8x8xf32>
    %98 = tpu.matmul %96, %97, %cst_34 {dimension_numbers = #tpu.dot_dimension_numbers<[2], [1], [1], [2], [0, 0, 0, 1, 1, 2], [0], [0]>} : vector<2x8x8xbf16>, vector<2x8x8xbf16>, vector<2x8x8xf32> -> vector<2x8x8xf32>
    "tpu.trace_stop"() : () -> ()
    %99 = vector.extract_strided_slice %56 {offsets = [0, 0, 16], sizes = [2, 8, 8], strides = [1, 1, 1]} : vector<2x8x32xbf16> to vector<2x8x8xbf16>
    %100 = vector.extract_strided_slice %57 {offsets = [0, 0, 16], sizes = [2, 8, 8], strides = [1, 1, 1]} : vector<2x8x32xbf16> to vector<2x8x8xbf16>
    "tpu.trace_start"() <{level = 10 : i32, message = "bqd,bkd->bqk"}> : () -> ()
    %cst_35 = arith.constant dense<0.000000e+00> : vector<2x8x8xf32>
    %101 = tpu.matmul %99, %100, %cst_35 {dimension_numbers = #tpu.dot_dimension_numbers<[2], [2], [1], [1], [0, 0, 0, 1, 1, 1], [0], [0]>} : vector<2x8x8xbf16>, vector<2x8x8xbf16>, vector<2x8x8xf32> -> vector<2x8x8xf32>
    "tpu.trace_stop"() : () -> ()
    %cst_36 = arith.constant 0.353553385 : f32
    %102 = vector.broadcast %cst_36 : f32 to vector<2x8x8xf32>
    %103 = arith.mulf %101, %102 : vector<2x8x8xf32>
    %cst_37 = arith.constant -1.000000e+09 : f32
    %104 = vector.broadcast %cst_37 : f32 to vector<2x8x8xf32>
    %105 = arith.select %6, %104, %103 : vector<2x8x8xi1>, vector<2x8x8xf32>
    %cst_38 = arith.constant dense<0xFF800000> : vector<2x8xf32>
    %106 = vector.multi_reduction <maximumf>, %105, %cst_38 [2] : vector<2x8x8xf32> to vector<2x8xf32>
    %107 = vector.shape_cast %106 : vector<2x8xf32> to vector<2x8x1xf32>
    %108 = vector.broadcast %107 : vector<2x8x1xf32> to vector<2x8x8xf32>
    %109 = arith.subf %105, %108 : vector<2x8x8xf32>
    %110 = math.exp %109 : vector<2x8x8xf32>
    %cst_39 = arith.constant dense<0.000000e+00> : vector<2x8xf32>
    %111 = vector.multi_reduction <add>, %110, %cst_39 [2] : vector<2x8x8xf32> to vector<2x8xf32>
    %112 = vector.shape_cast %111 : vector<2x8xf32> to vector<2x8x1xf32>
    %113 = tpu.reciprocal %112 {approx = true} : vector<2x8x1xf32> -> vector<2x8x1xf32>
    %114 = vector.broadcast %113 : vector<2x8x1xf32> to vector<2x8x8xf32>
    %115 = arith.mulf %110, %114 : vector<2x8x8xf32>
    %116 = arith.truncf %115 : vector<2x8x8xf32> to vector<2x8x8xbf16>
    %117 = vector.extract_strided_slice %58 {offsets = [0, 0, 16], sizes = [2, 8, 8], strides = [1, 1, 1]} : vector<2x8x32xbf16> to vector<2x8x8xbf16>
    "tpu.trace_start"() <{level = 10 : i32, message = "bqk,bkd->bqd"}> : () -> ()
    %cst_40 = arith.constant dense<0.000000e+00> : vector<2x8x8xf32>
    %118 = tpu.matmul %116, %117, %cst_40 {dimension_numbers = #tpu.dot_dimension_numbers<[2], [1], [1], [2], [0, 0, 0, 1, 1, 2], [0], [0]>} : vector<2x8x8xbf16>, vector<2x8x8xbf16>, vector<2x8x8xf32> -> vector<2x8x8xf32>
    "tpu.trace_stop"() : () -> ()
    %119 = vector.extract_strided_slice %56 {offsets = [0, 0, 24], sizes = [2, 8, 8], strides = [1, 1, 1]} : vector<2x8x32xbf16> to vector<2x8x8xbf16>
    %120 = vector.extract_strided_slice %57 {offsets = [0, 0, 24], sizes = [2, 8, 8], strides = [1, 1, 1]} : vector<2x8x32xbf16> to vector<2x8x8xbf16>
    "tpu.trace_start"() <{level = 10 : i32, message = "bqd,bkd->bqk"}> : () -> ()
    %cst_41 = arith.constant dense<0.000000e+00> : vector<2x8x8xf32>
    %121 = tpu.matmul %119, %120, %cst_41 {dimension_numbers = #tpu.dot_dimension_numbers<[2], [2], [1], [1], [0, 0, 0, 1, 1, 1], [0], [0]>} : vector<2x8x8xbf16>, vector<2x8x8xbf16>, vector<2x8x8xf32> -> vector<2x8x8xf32>
    "tpu.trace_stop"() : () -> ()
    %cst_42 = arith.constant 0.353553385 : f32
    %122 = vector.broadcast %cst_42 : f32 to vector<2x8x8xf32>
    %123 = arith.mulf %121, %122 : vector<2x8x8xf32>
    %cst_43 = arith.constant -1.000000e+09 : f32
    %124 = vector.broadcast %cst_43 : f32 to vector<2x8x8xf32>
    %125 = arith.select %6, %124, %123 : vector<2x8x8xi1>, vector<2x8x8xf32>
    %cst_44 = arith.constant dense<0xFF800000> : vector<2x8xf32>
    %126 = vector.multi_reduction <maximumf>, %125, %cst_44 [2] : vector<2x8x8xf32> to vector<2x8xf32>
    %127 = vector.shape_cast %126 : vector<2x8xf32> to vector<2x8x1xf32>
    %128 = vector.broadcast %127 : vector<2x8x1xf32> to vector<2x8x8xf32>
    %129 = arith.subf %125, %128 : vector<2x8x8xf32>
    %130 = math.exp %129 : vector<2x8x8xf32>
    %cst_45 = arith.constant dense<0.000000e+00> : vector<2x8xf32>
    %131 = vector.multi_reduction <add>, %130, %cst_45 [2] : vector<2x8x8xf32> to vector<2x8xf32>
    %132 = vector.shape_cast %131 : vector<2x8xf32> to vector<2x8x1xf32>
    %133 = tpu.reciprocal %132 {approx = true} : vector<2x8x1xf32> -> vector<2x8x1xf32>
    %134 = vector.broadcast %133 : vector<2x8x1xf32> to vector<2x8x8xf32>
    %135 = arith.mulf %130, %134 : vector<2x8x8xf32>
    %136 = arith.truncf %135 : vector<2x8x8xf32> to vector<2x8x8xbf16>
    %137 = vector.extract_strided_slice %58 {offsets = [0, 0, 24], sizes = [2, 8, 8], strides = [1, 1, 1]} : vector<2x8x32xbf16> to vector<2x8x8xbf16>
    "tpu.trace_start"() <{level = 10 : i32, message = "bqk,bkd->bqd"}> : () -> ()
    %cst_46 = arith.constant dense<0.000000e+00> : vector<2x8x8xf32>
    %138 = tpu.matmul %136, %137, %cst_46 {dimension_numbers = #tpu.dot_dimension_numbers<[2], [1], [1], [2], [0, 0, 0, 1, 1, 2], [0], [0]>} : vector<2x8x8xbf16>, vector<2x8x8xbf16>, vector<2x8x8xf32> -> vector<2x8x8xf32>
    "tpu.trace_stop"() : () -> ()
    %139 = tpu.concatenate %78, %98, %118, %138 in 2 : vector<2x8x8xf32>, vector<2x8x8xf32>, vector<2x8x8xf32>, vector<2x8x8xf32> -> vector<2x8x32xf32>
    %140 = vector.shape_cast %139 : vector<2x8x32xf32> to vector<16x32xf32>
    %141 = arith.truncf %140 : vector<16x32xf32> to vector<16x32xbf16>
    %c0_47 = arith.constant 0 : index
    %c0_48 = arith.constant 0 : index
    %142 = vector.load %arg6[%c0_47, %c0_48] : memref<32x32xbf16, #tpu.memory_space<vmem>>, vector<32x32xbf16>
    %cst_49 = arith.constant dense<0.000000e+00> : vector<16x32xf32>
    %143 = tpu.matmul %141, %142, %cst_49 {dimension_numbers = #tpu.dot_dimension_numbers<[1], [0], [0], [1], [0, 0, 1, 1], [], []>} : vector<16x32xbf16>, vector<32x32xbf16>, vector<16x32xf32> -> vector<16x32xf32>
    %144 = vector.extract_strided_slice %0 {offsets = [3, 0], sizes = [1, 32], strides = [1, 1]} : vector<13x32xf32> to vector<1x32xf32>
    %145 = vector.broadcast %144 : vector<1x32xf32> to vector<16x32xf32>
    %146 = arith.addf %143, %145 : vector<16x32xf32>
    %147 = arith.addf %2, %146 : vector<16x32xf32>
    %148 = vector.extract_strided_slice %0 {offsets = [11, 0], sizes = [1, 32], strides = [1, 1]} : vector<13x32xf32> to vector<1x32xf32>
    %149 = vector.extract_strided_slice %0 {offsets = [12, 0], sizes = [1, 32], strides = [1, 1]} : vector<13x32xf32> to vector<1x32xf32>
    %cst_50 = arith.constant dense<0.000000e+00> : vector<16xf32>
    %150 = vector.multi_reduction <add>, %147, %cst_50 [1] : vector<16x32xf32> to vector<16xf32>
    %151 = vector.shape_cast %150 : vector<16xf32> to vector<16x1xf32>
    %cst_51 = arith.constant 3.200000e+01 : f32
    %152 = vector.broadcast %cst_51 : f32 to vector<16x1xf32>
    %153 = arith.divf %151, %152 : vector<16x1xf32>
    %154 = vector.broadcast %153 : vector<16x1xf32> to vector<16x32xf32>
    %155 = arith.subf %147, %154 : vector<16x32xf32>
    %156 = arith.mulf %155, %155 : vector<16x32xf32>
    %cst_52 = arith.constant dense<0.000000e+00> : vector<16xf32>
    %157 = vector.multi_reduction <add>, %156, %cst_52 [1] : vector<16x32xf32> to vector<16xf32>
    %158 = vector.shape_cast %157 : vector<16xf32> to vector<16x1xf32>
    %cst_53 = arith.constant 0.0322580636 : f32
    %159 = vector.broadcast %cst_53 : f32 to vector<16x1xf32>
    %160 = arith.mulf %158, %159 : vector<16x1xf32>
    %161 = math.sqrt %160 : vector<16x1xf32>
    %cst_54 = arith.constant 9.99999997E-7 : f32
    %162 = vector.broadcast %cst_54 : f32 to vector<16x1xf32>
    %163 = arith.addf %161, %162 : vector<16x1xf32>
    %cst_55 = arith.constant 1.000000e+00 : f32
    %164 = vector.broadcast %cst_55 : f32 to vector<16x1xf32>
    %165 = arith.divf %164, %163 : vector<16x1xf32>
    %166 = vector.broadcast %153 : vector<16x1xf32> to vector<16x32xf32>
    %167 = arith.subf %147, %166 : vector<16x32xf32>
    %168 = vector.broadcast %148 : vector<1x32xf32> to vector<16x32xf32>
    %169 = arith.mulf %168, %167 : vector<16x32xf32>
    %170 = vector.broadcast %165 : vector<16x1xf32> to vector<16x32xf32>
    %171 = arith.mulf %169, %170 : vector<16x32xf32>
    %172 = vector.broadcast %149 : vector<1x32xf32> to vector<16x32xf32>
    %173 = arith.addf %171, %172 : vector<16x32xf32>
    %174 = arith.truncf %173 : vector<16x32xf32> to vector<16x32xbf16>
    %c0_56 = arith.constant 0 : index
    %c0_57 = arith.constant 0 : index
    %175 = vector.load %arg7[%c0_56, %c0_57] : memref<32x32xbf16, #tpu.memory_space<vmem>>, vector<32x32xbf16>
    %cst_58 = arith.constant dense<0.000000e+00> : vector<16x32xf32>
    %176 = tpu.matmul %174, %175, %cst_58 {dimension_numbers = #tpu.dot_dimension_numbers<[1], [0], [0], [1], [0, 0, 1, 1], [], []>} : vector<16x32xbf16>, vector<32x32xbf16>, vector<16x32xf32> -> vector<16x32xf32>
    %177 = vector.extract_strided_slice %0 {offsets = [4, 0], sizes = [1, 32], strides = [1, 1]} : vector<13x32xf32> to vector<1x32xf32>
    %178 = vector.broadcast %177 : vector<1x32xf32> to vector<16x32xf32>
    %179 = arith.addf %176, %178 : vector<16x32xf32>
    %180 = vector.shape_cast %179 : vector<16x32xf32> to vector<2x8x32xf32>
    %181 = vector.shape_cast %3 : vector<2x8x32xf32> to vector<16x32xf32>
    %182 = arith.truncf %181 : vector<16x32xf32> to vector<16x32xbf16>
    %c0_59 = arith.constant 0 : index
    %c0_60 = arith.constant 0 : index
    %183 = vector.load %arg8[%c0_59, %c0_60] : memref<32x64xbf16, #tpu.memory_space<vmem>>, vector<32x64xbf16>
    %cst_61 = arith.constant dense<0.000000e+00> : vector<16x64xf32>
    %184 = tpu.matmul %182, %183, %cst_61 {dimension_numbers = #tpu.dot_dimension_numbers<[1], [0], [0], [1], [0, 0, 1, 1], [], []>} : vector<16x32xbf16>, vector<32x64xbf16>, vector<16x64xf32> -> vector<16x64xf32>
    %185 = vector.extract_strided_slice %184 {offsets = [0, 0], sizes = [16, 32], strides = [1, 1]} : vector<16x64xf32> to vector<16x32xf32>
    %186 = vector.extract_strided_slice %0 {offsets = [5, 0], sizes = [1, 32], strides = [1, 1]} : vector<13x32xf32> to vector<1x32xf32>
    %187 = vector.broadcast %186 : vector<1x32xf32> to vector<16x32xf32>
    %188 = arith.addf %185, %187 : vector<16x32xf32>
    %189 = vector.shape_cast %188 : vector<16x32xf32> to vector<2x8x32xf32>
    %190 = vector.extract_strided_slice %184 {offsets = [0, 32], sizes = [16, 32], strides = [1, 1]} : vector<16x64xf32> to vector<16x32xf32>
    %191 = vector.extract_strided_slice %0 {offsets = [6, 0], sizes = [1, 32], strides = [1, 1]} : vector<13x32xf32> to vector<1x32xf32>
    %192 = vector.broadcast %191 : vector<1x32xf32> to vector<16x32xf32>
    %193 = arith.addf %190, %192 : vector<16x32xf32>
    %194 = vector.shape_cast %193 : vector<16x32xf32> to vector<2x8x32xf32>
    %195 = arith.truncf %180 : vector<2x8x32xf32> to vector<2x8x32xbf16>
    %196 = arith.truncf %189 : vector<2x8x32xf32> to vector<2x8x32xbf16>
    %197 = arith.truncf %194 : vector<2x8x32xf32> to vector<2x8x32xbf16>
    %198 = vector.extract_strided_slice %195 {offsets = [0, 0, 0], sizes = [2, 8, 8], strides = [1, 1, 1]} : vector<2x8x32xbf16> to vector<2x8x8xbf16>
    %199 = vector.extract_strided_slice %196 {offsets = [0, 0, 0], sizes = [2, 8, 8], strides = [1, 1, 1]} : vector<2x8x32xbf16> to vector<2x8x8xbf16>
    "tpu.trace_start"() <{level = 10 : i32, message = "bqd,bkd->bqk"}> : () -> ()
    %cst_62 = arith.constant dense<0.000000e+00> : vector<2x8x8xf32>
    %200 = tpu.matmul %198, %199, %cst_62 {dimension_numbers = #tpu.dot_dimension_numbers<[2], [2], [1], [1], [0, 0, 0, 1, 1, 1], [0], [0]>} : vector<2x8x8xbf16>, vector<2x8x8xbf16>, vector<2x8x8xf32> -> vector<2x8x8xf32>
    "tpu.trace_stop"() : () -> ()
    %cst_63 = arith.constant 0.353553385 : f32
    %201 = vector.broadcast %cst_63 : f32 to vector<2x8x8xf32>
    %202 = arith.mulf %200, %201 : vector<2x8x8xf32>
    %cst_64 = arith.constant -1.000000e+09 : f32
    %203 = vector.broadcast %cst_64 : f32 to vector<2x8x8xf32>
    %204 = arith.select %11, %203, %202 : vector<2x8x8xi1>, vector<2x8x8xf32>
    %cst_65 = arith.constant dense<0xFF800000> : vector<2x8xf32>
    %205 = vector.multi_reduction <maximumf>, %204, %cst_65 [2] : vector<2x8x8xf32> to vector<2x8xf32>
    %206 = vector.shape_cast %205 : vector<2x8xf32> to vector<2x8x1xf32>
    %207 = vector.broadcast %206 : vector<2x8x1xf32> to vector<2x8x8xf32>
    %208 = arith.subf %204, %207 : vector<2x8x8xf32>
    %209 = math.exp %208 : vector<2x8x8xf32>
    %cst_66 = arith.constant dense<0.000000e+00> : vector<2x8xf32>
    %210 = vector.multi_reduction <add>, %209, %cst_66 [2] : vector<2x8x8xf32> to vector<2x8xf32>
    %211 = vector.shape_cast %210 : vector<2x8xf32> to vector<2x8x1xf32>
    %212 = tpu.reciprocal %211 {approx = true} : vector<2x8x1xf32> -> vector<2x8x1xf32>
    %213 = vector.broadcast %212 : vector<2x8x1xf32> to vector<2x8x8xf32>
    %214 = arith.mulf %209, %213 : vector<2x8x8xf32>
    %215 = arith.truncf %214 : vector<2x8x8xf32> to vector<2x8x8xbf16>
    %216 = vector.extract_strided_slice %197 {offsets = [0, 0, 0], sizes = [2, 8, 8], strides = [1, 1, 1]} : vector<2x8x32xbf16> to vector<2x8x8xbf16>
    "tpu.trace_start"() <{level = 10 : i32, message = "bqk,bkd->bqd"}> : () -> ()
    %cst_67 = arith.constant dense<0.000000e+00> : vector<2x8x8xf32>
    %217 = tpu.matmul %215, %216, %cst_67 {dimension_numbers = #tpu.dot_dimension_numbers<[2], [1], [1], [2], [0, 0, 0, 1, 1, 2], [0], [0]>} : vector<2x8x8xbf16>, vector<2x8x8xbf16>, vector<2x8x8xf32> -> vector<2x8x8xf32>
    "tpu.trace_stop"() : () -> ()
    %218 = vector.extract_strided_slice %195 {offsets = [0, 0, 8], sizes = [2, 8, 8], strides = [1, 1, 1]} : vector<2x8x32xbf16> to vector<2x8x8xbf16>
    %219 = vector.extract_strided_slice %196 {offsets = [0, 0, 8], sizes = [2, 8, 8], strides = [1, 1, 1]} : vector<2x8x32xbf16> to vector<2x8x8xbf16>
    "tpu.trace_start"() <{level = 10 : i32, message = "bqd,bkd->bqk"}> : () -> ()
    %cst_68 = arith.constant dense<0.000000e+00> : vector<2x8x8xf32>
    %220 = tpu.matmul %218, %219, %cst_68 {dimension_numbers = #tpu.dot_dimension_numbers<[2], [2], [1], [1], [0, 0, 0, 1, 1, 1], [0], [0]>} : vector<2x8x8xbf16>, vector<2x8x8xbf16>, vector<2x8x8xf32> -> vector<2x8x8xf32>
    "tpu.trace_stop"() : () -> ()
    %cst_69 = arith.constant 0.353553385 : f32
    %221 = vector.broadcast %cst_69 : f32 to vector<2x8x8xf32>
    %222 = arith.mulf %220, %221 : vector<2x8x8xf32>
    %cst_70 = arith.constant -1.000000e+09 : f32
    %223 = vector.broadcast %cst_70 : f32 to vector<2x8x8xf32>
    %224 = arith.select %11, %223, %222 : vector<2x8x8xi1>, vector<2x8x8xf32>
    %cst_71 = arith.constant dense<0xFF800000> : vector<2x8xf32>
    %225 = vector.multi_reduction <maximumf>, %224, %cst_71 [2] : vector<2x8x8xf32> to vector<2x8xf32>
    %226 = vector.shape_cast %225 : vector<2x8xf32> to vector<2x8x1xf32>
    %227 = vector.broadcast %226 : vector<2x8x1xf32> to vector<2x8x8xf32>
    %228 = arith.subf %224, %227 : vector<2x8x8xf32>
    %229 = math.exp %228 : vector<2x8x8xf32>
    %cst_72 = arith.constant dense<0.000000e+00> : vector<2x8xf32>
    %230 = vector.multi_reduction <add>, %229, %cst_72 [2] : vector<2x8x8xf32> to vector<2x8xf32>
    %231 = vector.shape_cast %230 : vector<2x8xf32> to vector<2x8x1xf32>
    %232 = tpu.reciprocal %231 {approx = true} : vector<2x8x1xf32> -> vector<2x8x1xf32>
    %233 = vector.broadcast %232 : vector<2x8x1xf32> to vector<2x8x8xf32>
    %234 = arith.mulf %229, %233 : vector<2x8x8xf32>
    %235 = arith.truncf %234 : vector<2x8x8xf32> to vector<2x8x8xbf16>
    %236 = vector.extract_strided_slice %197 {offsets = [0, 0, 8], sizes = [2, 8, 8], strides = [1, 1, 1]} : vector<2x8x32xbf16> to vector<2x8x8xbf16>
    "tpu.trace_start"() <{level = 10 : i32, message = "bqk,bkd->bqd"}> : () -> ()
    %cst_73 = arith.constant dense<0.000000e+00> : vector<2x8x8xf32>
    %237 = tpu.matmul %235, %236, %cst_73 {dimension_numbers = #tpu.dot_dimension_numbers<[2], [1], [1], [2], [0, 0, 0, 1, 1, 2], [0], [0]>} : vector<2x8x8xbf16>, vector<2x8x8xbf16>, vector<2x8x8xf32> -> vector<2x8x8xf32>
    "tpu.trace_stop"() : () -> ()
    %238 = vector.extract_strided_slice %195 {offsets = [0, 0, 16], sizes = [2, 8, 8], strides = [1, 1, 1]} : vector<2x8x32xbf16> to vector<2x8x8xbf16>
    %239 = vector.extract_strided_slice %196 {offsets = [0, 0, 16], sizes = [2, 8, 8], strides = [1, 1, 1]} : vector<2x8x32xbf16> to vector<2x8x8xbf16>
    "tpu.trace_start"() <{level = 10 : i32, message = "bqd,bkd->bqk"}> : () -> ()
    %cst_74 = arith.constant dense<0.000000e+00> : vector<2x8x8xf32>
    %240 = tpu.matmul %238, %239, %cst_74 {dimension_numbers = #tpu.dot_dimension_numbers<[2], [2], [1], [1], [0, 0, 0, 1, 1, 1], [0], [0]>} : vector<2x8x8xbf16>, vector<2x8x8xbf16>, vector<2x8x8xf32> -> vector<2x8x8xf32>
    "tpu.trace_stop"() : () -> ()
    %cst_75 = arith.constant 0.353553385 : f32
    %241 = vector.broadcast %cst_75 : f32 to vector<2x8x8xf32>
    %242 = arith.mulf %240, %241 : vector<2x8x8xf32>
    %cst_76 = arith.constant -1.000000e+09 : f32
    %243 = vector.broadcast %cst_76 : f32 to vector<2x8x8xf32>
    %244 = arith.select %11, %243, %242 : vector<2x8x8xi1>, vector<2x8x8xf32>
    %cst_77 = arith.constant dense<0xFF800000> : vector<2x8xf32>
    %245 = vector.multi_reduction <maximumf>, %244, %cst_77 [2] : vector<2x8x8xf32> to vector<2x8xf32>
    %246 = vector.shape_cast %245 : vector<2x8xf32> to vector<2x8x1xf32>
    %247 = vector.broadcast %246 : vector<2x8x1xf32> to vector<2x8x8xf32>
    %248 = arith.subf %244, %247 : vector<2x8x8xf32>
    %249 = math.exp %248 : vector<2x8x8xf32>
    %cst_78 = arith.constant dense<0.000000e+00> : vector<2x8xf32>
    %250 = vector.multi_reduction <add>, %249, %cst_78 [2] : vector<2x8x8xf32> to vector<2x8xf32>
    %251 = vector.shape_cast %250 : vector<2x8xf32> to vector<2x8x1xf32>
    %252 = tpu.reciprocal %251 {approx = true} : vector<2x8x1xf32> -> vector<2x8x1xf32>
    %253 = vector.broadcast %252 : vector<2x8x1xf32> to vector<2x8x8xf32>
    %254 = arith.mulf %249, %253 : vector<2x8x8xf32>
    %255 = arith.truncf %254 : vector<2x8x8xf32> to vector<2x8x8xbf16>
    %256 = vector.extract_strided_slice %197 {offsets = [0, 0, 16], sizes = [2, 8, 8], strides = [1, 1, 1]} : vector<2x8x32xbf16> to vector<2x8x8xbf16>
    "tpu.trace_start"() <{level = 10 : i32, message = "bqk,bkd->bqd"}> : () -> ()
    %cst_79 = arith.constant dense<0.000000e+00> : vector<2x8x8xf32>
    %257 = tpu.matmul %255, %256, %cst_79 {dimension_numbers = #tpu.dot_dimension_numbers<[2], [1], [1], [2], [0, 0, 0, 1, 1, 2], [0], [0]>} : vector<2x8x8xbf16>, vector<2x8x8xbf16>, vector<2x8x8xf32> -> vector<2x8x8xf32>
    "tpu.trace_stop"() : () -> ()
    %258 = vector.extract_strided_slice %195 {offsets = [0, 0, 24], sizes = [2, 8, 8], strides = [1, 1, 1]} : vector<2x8x32xbf16> to vector<2x8x8xbf16>
    %259 = vector.extract_strided_slice %196 {offsets = [0, 0, 24], sizes = [2, 8, 8], strides = [1, 1, 1]} : vector<2x8x32xbf16> to vector<2x8x8xbf16>
    "tpu.trace_start"() <{level = 10 : i32, message = "bqd,bkd->bqk"}> : () -> ()
    %cst_80 = arith.constant dense<0.000000e+00> : vector<2x8x8xf32>
    %260 = tpu.matmul %258, %259, %cst_80 {dimension_numbers = #tpu.dot_dimension_numbers<[2], [2], [1], [1], [0, 0, 0, 1, 1, 1], [0], [0]>} : vector<2x8x8xbf16>, vector<2x8x8xbf16>, vector<2x8x8xf32> -> vector<2x8x8xf32>
    "tpu.trace_stop"() : () -> ()
    %cst_81 = arith.constant 0.353553385 : f32
    %261 = vector.broadcast %cst_81 : f32 to vector<2x8x8xf32>
    %262 = arith.mulf %260, %261 : vector<2x8x8xf32>
    %cst_82 = arith.constant -1.000000e+09 : f32
    %263 = vector.broadcast %cst_82 : f32 to vector<2x8x8xf32>
    %264 = arith.select %11, %263, %262 : vector<2x8x8xi1>, vector<2x8x8xf32>
    %cst_83 = arith.constant dense<0xFF800000> : vector<2x8xf32>
    %265 = vector.multi_reduction <maximumf>, %264, %cst_83 [2] : vector<2x8x8xf32> to vector<2x8xf32>
    %266 = vector.shape_cast %265 : vector<2x8xf32> to vector<2x8x1xf32>
    %267 = vector.broadcast %266 : vector<2x8x1xf32> to vector<2x8x8xf32>
    %268 = arith.subf %264, %267 : vector<2x8x8xf32>
    %269 = math.exp %268 : vector<2x8x8xf32>
    %cst_84 = arith.constant dense<0.000000e+00> : vector<2x8xf32>
    %270 = vector.multi_reduction <add>, %269, %cst_84 [2] : vector<2x8x8xf32> to vector<2x8xf32>
    %271 = vector.shape_cast %270 : vector<2x8xf32> to vector<2x8x1xf32>
    %272 = tpu.reciprocal %271 {approx = true} : vector<2x8x1xf32> -> vector<2x8x1xf32>
    %273 = vector.broadcast %272 : vector<2x8x1xf32> to vector<2x8x8xf32>
    %274 = arith.mulf %269, %273 : vector<2x8x8xf32>
    %275 = arith.truncf %274 : vector<2x8x8xf32> to vector<2x8x8xbf16>
    %276 = vector.extract_strided_slice %197 {offsets = [0, 0, 24], sizes = [2, 8, 8], strides = [1, 1, 1]} : vector<2x8x32xbf16> to vector<2x8x8xbf16>
    "tpu.trace_start"() <{level = 10 : i32, message = "bqk,bkd->bqd"}> : () -> ()
    %cst_85 = arith.constant dense<0.000000e+00> : vector<2x8x8xf32>
    %277 = tpu.matmul %275, %276, %cst_85 {dimension_numbers = #tpu.dot_dimension_numbers<[2], [1], [1], [2], [0, 0, 0, 1, 1, 2], [0], [0]>} : vector<2x8x8xbf16>, vector<2x8x8xbf16>, vector<2x8x8xf32> -> vector<2x8x8xf32>
    "tpu.trace_stop"() : () -> ()
    %278 = tpu.concatenate %217, %237, %257, %277 in 2 : vector<2x8x8xf32>, vector<2x8x8xf32>, vector<2x8x8xf32>, vector<2x8x8xf32> -> vector<2x8x32xf32>
    %279 = vector.shape_cast %278 : vector<2x8x32xf32> to vector<16x32xf32>
    %280 = arith.truncf %279 : vector<16x32xf32> to vector<16x32xbf16>
    %c0_86 = arith.constant 0 : index
    %c0_87 = arith.constant 0 : index
    %281 = vector.load %arg9[%c0_86, %c0_87] : memref<32x32xbf16, #tpu.memory_space<vmem>>, vector<32x32xbf16>
    %cst_88 = arith.constant dense<0.000000e+00> : vector<16x32xf32>
    %282 = tpu.matmul %280, %281, %cst_88 {dimension_numbers = #tpu.dot_dimension_numbers<[1], [0], [0], [1], [0, 0, 1, 1], [], []>} : vector<16x32xbf16>, vector<32x32xbf16>, vector<16x32xf32> -> vector<16x32xf32>
    %283 = vector.extract_strided_slice %0 {offsets = [7, 0], sizes = [1, 32], strides = [1, 1]} : vector<13x32xf32> to vector<1x32xf32>
    %284 = vector.broadcast %283 : vector<1x32xf32> to vector<16x32xf32>
    %285 = arith.addf %282, %284 : vector<16x32xf32>
    %286 = arith.addf %147, %285 : vector<16x32xf32>
    %287 = vector.extract_strided_slice %0 {offsets = [11, 0], sizes = [1, 32], strides = [1, 1]} : vector<13x32xf32> to vector<1x32xf32>
    %288 = vector.extract_strided_slice %0 {offsets = [12, 0], sizes = [1, 32], strides = [1, 1]} : vector<13x32xf32> to vector<1x32xf32>
    %cst_89 = arith.constant dense<0.000000e+00> : vector<16xf32>
    %289 = vector.multi_reduction <add>, %286, %cst_89 [1] : vector<16x32xf32> to vector<16xf32>
    %290 = vector.shape_cast %289 : vector<16xf32> to vector<16x1xf32>
    %cst_90 = arith.constant 3.200000e+01 : f32
    %291 = vector.broadcast %cst_90 : f32 to vector<16x1xf32>
    %292 = arith.divf %290, %291 : vector<16x1xf32>
    %293 = vector.broadcast %292 : vector<16x1xf32> to vector<16x32xf32>
    %294 = arith.subf %286, %293 : vector<16x32xf32>
    %295 = arith.mulf %294, %294 : vector<16x32xf32>
    %cst_91 = arith.constant dense<0.000000e+00> : vector<16xf32>
    %296 = vector.multi_reduction <add>, %295, %cst_91 [1] : vector<16x32xf32> to vector<16xf32>
    %297 = vector.shape_cast %296 : vector<16xf32> to vector<16x1xf32>
    %cst_92 = arith.constant 0.0322580636 : f32
    %298 = vector.broadcast %cst_92 : f32 to vector<16x1xf32>
    %299 = arith.mulf %297, %298 : vector<16x1xf32>
    %300 = math.sqrt %299 : vector<16x1xf32>
    %cst_93 = arith.constant 9.99999997E-7 : f32
    %301 = vector.broadcast %cst_93 : f32 to vector<16x1xf32>
    %302 = arith.addf %300, %301 : vector<16x1xf32>
    %cst_94 = arith.constant 1.000000e+00 : f32
    %303 = vector.broadcast %cst_94 : f32 to vector<16x1xf32>
    %304 = arith.divf %303, %302 : vector<16x1xf32>
    %305 = vector.broadcast %292 : vector<16x1xf32> to vector<16x32xf32>
    %306 = arith.subf %286, %305 : vector<16x32xf32>
    %307 = vector.broadcast %287 : vector<1x32xf32> to vector<16x32xf32>
    %308 = arith.mulf %307, %306 : vector<16x32xf32>
    %309 = vector.broadcast %304 : vector<16x1xf32> to vector<16x32xf32>
    %310 = arith.mulf %308, %309 : vector<16x32xf32>
    %311 = vector.broadcast %288 : vector<1x32xf32> to vector<16x32xf32>
    %312 = arith.addf %310, %311 : vector<16x32xf32>
    %313 = arith.truncf %312 : vector<16x32xf32> to vector<16x32xbf16>
    %c0_95 = arith.constant 0 : index
    %c0_96 = arith.constant 0 : index
    %314 = vector.load %arg10[%c0_95, %c0_96] : memref<32x64xbf16, #tpu.memory_space<vmem>>, vector<32x64xbf16>
    %cst_97 = arith.constant dense<0.000000e+00> : vector<16x64xf32>
    %315 = tpu.matmul %313, %314, %cst_97 {dimension_numbers = #tpu.dot_dimension_numbers<[1], [0], [0], [1], [0, 0, 1, 1], [], []>} : vector<16x32xbf16>, vector<32x64xbf16>, vector<16x64xf32> -> vector<16x64xf32>
    %c0_98 = arith.constant 0 : index
    %c0_99 = arith.constant 0 : index
    %316 = vector.load %arg13[%c0_98, %c0_99] : memref<1x64xf32, #tpu.memory_space<vmem>>, vector<1x64xf32>
    %317 = vector.broadcast %316 : vector<1x64xf32> to vector<16x64xf32>
    %318 = arith.addf %315, %317 : vector<16x64xf32>
    %cst_100 = arith.constant 0.000000e+00 : f32
    %319 = vector.broadcast %cst_100 : f32 to vector<16x64xf32>
    %320 = arith.maximumf %318, %319 : vector<16x64xf32>
    %321 = arith.truncf %320 : vector<16x64xf32> to vector<16x64xbf16>
    %c0_101 = arith.constant 0 : index
    %c0_102 = arith.constant 0 : index
    %322 = vector.load %arg11[%c0_101, %c0_102] : memref<64x32xbf16, #tpu.memory_space<vmem>>, vector<64x32xbf16>
    %cst_103 = arith.constant dense<0.000000e+00> : vector<16x32xf32>
    %323 = tpu.matmul %321, %322, %cst_103 {dimension_numbers = #tpu.dot_dimension_numbers<[1], [0], [0], [1], [0, 0, 1, 1], [], []>} : vector<16x64xbf16>, vector<64x32xbf16>, vector<16x32xf32> -> vector<16x32xf32>
    %324 = vector.extract_strided_slice %0 {offsets = [8, 0], sizes = [1, 32], strides = [1, 1]} : vector<13x32xf32> to vector<1x32xf32>
    %325 = vector.broadcast %324 : vector<1x32xf32> to vector<16x32xf32>
    %326 = arith.addf %323, %325 : vector<16x32xf32>
    %327 = arith.addf %286, %326 : vector<16x32xf32>
    %328 = vector.shape_cast %327 : vector<16x32xf32> to vector<2x8x32xf32>
    %c0_104 = arith.constant 0 : index
    %c0_105 = arith.constant 0 : index
    %c0_106 = arith.constant 0 : index
    %329 = vector.load %arg14[%c0_104, %c0_105, %c0_106] : memref<2x8x32xf32, #tpu.memory_space<vmem>>, vector<2x8x32xf32>
    tpu.vector_store %arg14[%c0_104, %c0_105, %c0_106], %328 {strides = array<i32>} : memref<2x8x32xf32, #tpu.memory_space<vmem>>, vector<2x8x32xf32>,
    return
  }
  func.func @transform_0(%arg0: i32) -> (i32, i32, i32) {
    %c0_i32 = arith.constant 0 : i32
    %c0_i32_0 = arith.constant 0 : i32
    %c0_i32_1 = arith.constant 0 : i32
    return %arg0, %c0_i32, %c0_i32_0 : i32, i32, i32
  }
  func.func @transform_1(%arg0: i32) -> (i32, i32, i32) {
    %c0_i32 = arith.constant 0 : i32
    %c0_i32_0 = arith.constant 0 : i32
    %c0_i32_1 = arith.constant 0 : i32
    return %arg0, %c0_i32, %c0_i32_0 : i32, i32, i32
  }
  func.func @transform_2(%arg0: i32) -> (i32, i32, i32) {
    %c0_i32 = arith.constant 0 : i32
    %c0_i32_0 = arith.constant 0 : i32
    %c0_i32_1 = arith.constant 0 : i32
    return %arg0, %c0_i32, %c0_i32_0 : i32, i32, i32
  }
  func.func @transform_3(%arg0: i32) -> (i32, i32, i32) {
    %c0_i32 = arith.constant 0 : i32
    %c0_i32_0 = arith.constant 0 : i32
    %c0_i32_1 = arith.constant 0 : i32
    return %arg0, %c0_i32, %c0_i32_0 : i32, i32, i32
  }
  func.func @transform_4(%arg0: i32) -> (i32, i32) {
    %c0_i32 = arith.constant 0 : i32
    %c0_i32_0 = arith.constant 0 : i32
    %c0_i32_1 = arith.constant 0 : i32
    return %c0_i32, %c0_i32_0 : i32, i32
  }
  func.func @transform_5(%arg0: i32) -> (i32, i32) {
    %c0_i32 = arith.constant 0 : i32
    %c0_i32_0 = arith.constant 0 : i32
    %c0_i32_1 = arith.constant 0 : i32
    return %c0_i32, %c0_i32_0 : i32, i32
  }
  func.func @transform_6(%arg0: i32) -> (i32, i32) {
    %c0_i32 = arith.constant 0 : i32
    %c0_i32_0 = arith.constant 0 : i32
    %c0_i32_1 = arith.constant 0 : i32
    return %c0_i32, %c0_i32_0 : i32, i32
  }
  func.func @transform_7(%arg0: i32) -> (i32, i32) {
    %c0_i32 = arith.constant 0 : i32
    %c0_i32_0 = arith.constant 0 : i32
    %c0_i32_1 = arith.constant 0 : i32
    return %c0_i32, %c0_i32_0 : i32, i32
  }
  func.func @transform_8(%arg0: i32) -> (i32, i32) {
    %c0_i32 = arith.constant 0 : i32
    %c0_i32_0 = arith.constant 0 : i32
    %c0_i32_1 = arith.constant 0 : i32
    return %c0_i32, %c0_i32_0 : i32, i32
  }
  func.func @transform_9(%arg0: i32) -> (i32, i32) {
    %c0_i32 = arith.constant 0 : i32
    %c0_i32_0 = arith.constant 0 : i32
    %c0_i32_1 = arith.constant 0 : i32
    return %c0_i32, %c0_i32_0 : i32, i32
  }
  func.func @transform_10(%arg0: i32) -> (i32, i32) {
    %c0_i32 = arith.constant 0 : i32
    %c0_i32_0 = arith.constant 0 : i32
    %c0_i32_1 = arith.constant 0 : i32
    return %c0_i32, %c0_i32_0 : i32, i32
  }
  func.func @transform_11(%arg0: i32) -> (i32, i32) {
    %c0_i32 = arith.constant 0 : i32
    %c0_i32_0 = arith.constant 0 : i32
    %c0_i32_1 = arith.constant 0 : i32
    return %c0_i32, %c0_i32_0 : i32, i32
  }
  func.func @transform_12(%arg0: i32) -> (i32, i32) {
    %c0_i32 = arith.constant 0 : i32
    %c0_i32_0 = arith.constant 0 : i32
    %c0_i32_1 = arith.constant 0 : i32
    return %c0_i32, %c0_i32_0 : i32, i32
  }
  func.func @transform_13(%arg0: i32) -> (i32, i32, i32) {
    %c0_i32 = arith.constant 0 : i32
    %c0_i32_0 = arith.constant 0 : i32
    %c0_i32_1 = arith.constant 0 : i32
    return %arg0, %c0_i32, %c0_i32_0 : i32, i32, i32
  }
}

</mosaic_0001>

<bundles_post_ra>
// kernel: tpu_custom_call.1
= control target key start
LH: loop header
LB: loop body
LE: loop exit
PB: predicated region body
PF: predicated region fallthrough
CT: control target
= control target key end

     0   :  { %18 = vsyncpa [#allocation3], 0  ;;  %s4242_s0 = inlined_call_operand.vmem [shape: f32[2,8,32], index: 0, kind: input, shape index: {}]   ;;  %s4243_s1 = inlined_call_operand.vmem [shape: f32[2,8,32], index: 1, kind: input, shape index: {}]   ;;  %s4244_s2 = inlined_call_operand.vmem [shape: f32[2,8,8], index: 2, kind: input, shape index: {}]   ;;  %s4245_s3 = inlined_call_operand.vmem [shape: f32[2,1,8], index: 3, kind: input, shape index: {}]   ;;  %s4246_s4 = inlined_call_operand.hbm [shape: bf16[32,96], index: 4, kind: input, shape index: {}]   ;;  %s4247_s5 = inlined_call_operand.hbm [shape: bf16[32,32], index: 5, kind: input, shape index: {}]   ;;  %s4248_s6 = inlined_call_operand.hbm [shape: bf16[32,32], index: 6, kind: input, shape index: {}]   ;;  %s4249_s7 = inlined_call_operand.hbm [shape: bf16[32,64], index: 7, kind: input, shape index: {}]   ;;  %s4250_s8 = inlined_call_operand.hbm [shape: bf16[32,32], index: 8, kind: input, shape index: {}]   ;;  %s4251_s9 = inlined_call_operand.vmem [shape: bf16[32,64], index: 9, kind: input, shape index: {}]   ;;  %s4252_s10 = inlined_call_operand.vmem [shape: bf16[64,32], index: 10, kind: input, shape index: {}]   ;;  %s4253_s11 = inlined_call_operand.hbm [shape: f32[13,32], index: 11, kind: input, shape index: {}]   ;;  %s4254_s12 = inlined_call_operand.vmem [shape: f32[1,64], index: 12, kind: input, shape index: {}]   ;;  %s4255_s13 = inlined_call_operand.hbm [shape: f32[2,8,32], index: 13, kind: output, shape index: {}]  }
   0x1   :  { %19 = vsyncpa [#allocation6], 0 }
   0x2   :  { %20 = vsyncpa [#allocation9], 0 }
   0x3   :  { %21 = vsyncpa [#allocation12], 0 }
   0x4   :  { %22 = vsyncpa [#allocation4], 0  ;;  %s3439_s25 = smov [#allocation5]   ;;  %s3440_s27 = smov [#allocation8]  }
   0x5   :  { %s48_s26 = sshll.u32 %s3439_s25, 4  ;;  %s72_s28 = sshll.u32 %s3440_s27, 4  ;;  %s49_s26 = int_to_ptr.vmem [resolvable:$true] %s48_s26  ;;  %s3536_s28 = int_to_ptr.vmem [resolvable:$true] %s72_s28 }
   0x6   :  { %s3275_s14 = scalar_lea.hbm %s4247_s5, 256 }
   0x7   :  { %p3276_p0 = scmp.ne.s32.totalorder %s4247_s5, %s3275_s14  ;;  %p3279_p1 = scmp.lt.u32.totalorder %s3275_s14, %s4247_s5 }
   0x9   :  { %p3281_p2 = pnand %p3279_p1, %p3276_p0 }
   0xb   :  { %3284 = shalt.err (!%p3281_p2)
}
   0xc   :  { %s3285_s19 = scalar_lea.vmem %s49_s26, 256  ;;  %p3290_p4 = scmp.lt.s32.totalorder %s49_s26, %s49_s26 }
   0xd   :  { %p3286_p3 = scmp.ne.s32.totalorder %s49_s26, %s3285_s19  ;;  %p3291_p5 = scmp.lt.s32.totalorder %s3285_s19, %s3285_s19 }
   0xf   :  { %p3292_p6 = por %p3291_p5, %p3290_p4 }
  0x11   :  { %p3293_p7 = pnand %p3292_p6, %p3286_p3 }
  0x13   :  { %3296 = shalt.err (!%p3293_p7)
}
  0x14   :  { %s3441_s20 = smov 64   ;;  %s3442_s21 = smov 4  }
  0x15   :  { %54 = dma.hbm_to_vmem [thread:$0]  %s4247_s5, 256, %s49_s26, [#allocation6], %s3441_s20, %s3441_s20, %s3442_s21  }
  0x16   :  { %s3297_s27 = scalar_lea.hbm %s4249_s7, 256 }
  0x17   :  { %p3298_p8 = scmp.ne.s32.totalorder %s4249_s7, %s3297_s27  ;;  %p3301_p9 = scmp.lt.u32.totalorder %s3297_s27, %s4249_s7 }
  0x19   :  { %p3303_p10 = pnand %p3301_p9, %p3298_p8 }
  0x1b   :  { %3306 = shalt.err (!%p3303_p10)
}
  0x1c   :  { %s3307_s16 = scalar_lea.vmem %s3536_s28, 256  ;;  %p3312_p12 = scmp.lt.s32.totalorder %s3536_s28, %s3536_s28 }
  0x1d   :  { %p3308_p11 = scmp.ne.s32.totalorder %s3536_s28, %s3307_s16  ;;  %p3313_p13 = scmp.lt.s32.totalorder %s3307_s16, %s3307_s16 }
  0x1f   :  { %p3314_p0 = por %p3313_p13, %p3312_p12 }
  0x21   :  { %p3315_p1 = pnand %p3314_p0, %p3308_p11 }
  0x23   :  { %3318 = shalt.err (!%p3315_p1)
}
  0x24   :  { %78 = dma.hbm_to_vmem [thread:$0]  %s4249_s7, 256, %s3536_s28, [#allocation9], %s3441_s20, %s3441_s20, %s3442_s21  }
  0x25   :  { %s3443_s17 = smov [#allocation2]   ;;  %s3444_s19 = smov [#allocation7]  }
  0x26   :  { %s36_s18 = sshll.u32 %s3443_s17, 4  ;;  %s60_s22 = sshll.u32 %s3444_s19, 4  ;;  %s37_s18 = int_to_ptr.vmem [resolvable:$true] %s36_s18  ;;  %s3573_s22 = int_to_ptr.vmem [resolvable:$true] %s60_s22 }
  0x27   :  { %s3319_s25 = scalar_lea.hbm %s4246_s4, 256 }
  0x28   :  { %p3320_p2 = scmp.ne.s32.totalorder %s4246_s4, %s3319_s25  ;;  %p3323_p3 = scmp.lt.u32.totalorder %s3319_s25, %s4246_s4 }
  0x2a   :  { %p3325_p4 = pnand %p3323_p3, %p3320_p2 }
  0x2c   :  { %3328 = shalt.err (!%p3325_p4)
}
  0x2d   :  { %s3329_s7 = scalar_lea.vmem %s37_s18, 256  ;;  %p3334_p6 = scmp.lt.s32.totalorder %s37_s18, %s37_s18 }
  0x2e   :  { %p3330_p5 = scmp.ne.s32.totalorder %s37_s18, %s3329_s7  ;;  %p3335_p7 = scmp.lt.s32.totalorder %s3329_s7, %s3329_s7 }
  0x30   :  { %p3336_p8 = por %p3335_p7, %p3334_p6 }
  0x32   :  { %p3337_p9 = pnand %p3336_p8, %p3330_p5 }
  0x34   :  { %3340 = shalt.err (!%p3337_p9)
}
  0x35   :  { %42 = dma.hbm_to_vmem [thread:$0]  %s4246_s4, 256, %s37_s18, [#allocation3], %s3441_s20, %s3441_s20, %s3442_s21  }
  0x36   :  { %s3341_s26 = scalar_lea.hbm %s4248_s6, 256 }
  0x37   :  { %p3342_p10 = scmp.ne.s32.totalorder %s4248_s6, %s3341_s26  ;;  %p3345_p11 = scmp.lt.u32.totalorder %s3341_s26, %s4248_s6 }
  0x39   :  { %p3347_p12 = pnand %p3345_p11, %p3342_p10 }
  0x3b   :  { %3350 = shalt.err (!%p3347_p12)
}
  0x3c   :  { %s3351_s25 = scalar_lea.vmem %s3573_s22, 256  ;;  %p3356_p0 = scmp.lt.s32.totalorder %s3573_s22, %s3573_s22 }
  0x3d   :  { %p3352_p13 = scmp.ne.s32.totalorder %s3573_s22, %s3351_s25  ;;  %p3357_p1 = scmp.lt.s32.totalorder %s3351_s25, %s3351_s25 }
  0x3f   :  { %p3358_p2 = por %p3357_p1, %p3356_p0 }
  0x41   :  { %p3359_p3 = pnand %p3358_p2, %p3352_p13 }
  0x43   :  { %3362 = shalt.err (!%p3359_p3)
}
  0x44   :  { %66 = dma.hbm_to_vmem [thread:$0]  %s4248_s6, 256, %s3573_s22, [#allocation6], %s3441_s20, %s3441_s20, %s3442_s21  }
  0x45   :  { %s3445_s27 = smov [#allocation10]   ;;  %s3446_s30 = smov [#allocation11]  }
  0x46   :  { %s84_s29 = sshll.u32 %s3445_s27, 4  ;;  %s100_s14 = sshll.u32 %s3446_s30, 4  ;;  %s85_s29 = int_to_ptr.vmem [resolvable:$true] %s84_s29  ;;  %s3610_s14 = int_to_ptr.vmem [resolvable:$true] %s100_s14 }
  0x47   :  { %s3363_s15 = scalar_lea.hbm %s4250_s8, 256 }
  0x48   :  { %p3364_p4 = scmp.ne.s32.totalorder %s4250_s8, %s3363_s15  ;;  %p3367_p5 = scmp.lt.u32.totalorder %s3363_s15, %s4250_s8 }
  0x4a   :  { %p3369_p6 = pnand %p3367_p5, %p3364_p4 }
  0x4c   :  { %3372 = shalt.err (!%p3369_p6)
}
  0x4d   :  { %s3373_s6 = scalar_lea.vmem %s85_s29, 256  ;;  %p3378_p8 = scmp.lt.s32.totalorder %s85_s29, %s85_s29 }
  0x4e   :  { %p3374_p7 = scmp.ne.s32.totalorder %s85_s29, %s3373_s6  ;;  %p3379_p9 = scmp.lt.s32.totalorder %s3373_s6, %s3373_s6 }
  0x50   :  { %p3380_p10 = por %p3379_p9, %p3378_p8 }
  0x52   :  { %p3381_p11 = pnand %p3380_p10, %p3374_p7 }
  0x54   :  { %3384 = shalt.err (!%p3381_p11)
}
  0x55   :  { %90 = dma.hbm_to_vmem [thread:$0]  %s4250_s8, 256, %s85_s29, [#allocation9], %s3441_s20, %s3441_s20, %s3442_s21  }
  0x56   :  { %s3385_s25 = scalar_lea.hbm %s4253_s11, 256 }
  0x57   :  { %p3386_p12 = scmp.ne.s32.totalorder %s4253_s11, %s3385_s25  ;;  %p3389_p13 = scmp.lt.u32.totalorder %s3385_s25, %s4253_s11 }
  0x59   :  { %p3391_p0 = pnand %p3389_p13, %p3386_p12 }
  0x5b   :  { %3394 = shalt.err (!%p3391_p0)
}
  0x5c   :  { %s3395_s7 = scalar_lea.vmem %s3610_s14, 256  ;;  %p3400_p2 = scmp.lt.s32.totalorder %s3610_s14, %s3610_s14 }
  0x5d   :  { %p3396_p1 = scmp.ne.s32.totalorder %s3610_s14, %s3395_s7  ;;  %p3401_p3 = scmp.lt.s32.totalorder %s3395_s7, %s3395_s7 }
  0x5f   :  { %p3402_p4 = por %p3401_p3, %p3400_p2 }
  0x61   :  { %p3403_p5 = pnand %p3402_p4, %p3396_p1 }
  0x63   :  { %3406 = shalt.err (!%p3403_p5)
}
  0x64   :  { %s3447_s8 = smov 128   ;;  %s3448_s21 = smov 8  }
  0x65   :  { %106 = dma.hbm_to_vmem [thread:$0]  %s4253_s11, 256, %s3610_s14, [#allocation12], %s3447_s8, %s3447_s8, %s3448_s21  }
  0x66   :  { %3429 = dma.done.wait [#allocation3], 256  }
  0x67   :  { %3430 = vsyncadd [#allocation3], 4294967040 }
  0x68   :  { %3431 = dma.done.wait [#allocation6], 512  }
  0x69   :  { %3432 = vsyncadd [#allocation6], 4294966784 }
  0x6a   :  { %3433 = dma.done.wait [#allocation9], 512  }
  0x6b   :  { %3434 = vsyncadd [#allocation9], 4294966784 }
  0x6c   :  { %3435 = dma.done.wait [#allocation12], 256  }
  0x6d   :  { %3436 = vsyncadd [#allocation12], 4294967040  ;;  %vm154_vm0 = vcmask 261120   ;;  %v3650_v0 = vld [vmem:[%s4242_s0] sm:$0xff]  ;;  %v3655_v1 = vld [vmem:[%s4242_s0 + $0x8] sm:$0xff]  ;;  %v3449_v15 = vmov 0.0   ;;  %v144_v17 = vlaneseq }
  0x6e   :  { %v155_v2 = vsel %vm154_vm0, %v3650_v0, 0.0  ;;  %v158_v3 = vsel %vm154_vm0, %v3655_v1, 0.0  ;;  %v3169_v14 = vld [vmem:[#allocation2] sm:$0xff]   ;;  %2860 = vmatprep.subr.bf16.mxu1 %v3449_v15  ;;  %vm3450_vm1 = vmmov 0   ;;  %v3170_v16 = vld [vmem:[#allocation2 + $0x8] sm:$0xff]   ;;  %2874 = vmatprep.subr.bf16.mxu0 %v3449_v15  ;;  %v3676_v20 = vld [vmem:[#allocation11] sm:$0xff] }
  0x6f   :  { %156 = vadd.xlane.f32.xlu0 %v155_v2  ;;  %2864 = vmatprep.mubr.msk.bf16.mxu1 %vm3450_vm1, %v3449_v15  ;;  %v3673_v18 = vshrl.u32 %v144_v17, 7  ;;  %s3451_s0 = smov 32   ;;  %v3680_v38 = vld [vmem:[#allocation11 + $0x8] sm:$0x1f]  ;;  %s3452_s11 = smov 96   ;;  %vm306_vm6 = vcmask 64512  }
  0x70   :  { %2861 = vmatpush3.bf16.msra.mxu1 %v3169_v14  ;;  %2876 = vmatprep.mubr.msk.bf16.mxu0 %vm3450_vm1, %v3449_v15  ;;  %s3454_s19 = smov 120   ;;  %vm436_vm9 = vcmask 1043456   ;;  %s3456_s23 = smov 80   ;;  %vm1229_vm10 = vcmask 130048   ;;  %vm1232_vm11 = vcmask 195584  }
  0x71   :  { %2862 = vmatprep.subr.bf16.mxu1 %v3449_v15  ;;  %v198_v19 = vsub.s32 1, %v3673_v18  ;;  %v206_v40 = vsub.s32 2, %v3673_v18  ;;  %v3699_v60 = vsub.s32 0, %v3673_v18  ;;  %s3457_s24 = smov 112   ;;  %s3458_s25 = smov 48  }
  0x72   :  { %s3459_s4 = smov 72   ;;  %s3460_s18 = smov 104  }
  0x73   :  { %159 = vadd.xlane.f32.xlu0 %v158_v3  ;;  %v280_v21 = vrot.slane %v3676_v20, %v198_v19  ;;  %v199_v39 = vrot.slane %v3680_v38, %v198_v19  ;;  %v207_v45 = vrot.slane %v3680_v38, %v206_v40  ;;  %v274_v61 = vrot.slane %v3676_v20, %v3699_v60  ;;  %s3461_s27 = smov 40   ;;  %s3462_s30 = smov 16  }
  0x74   :  { %2863 = vmatpush3.bf16.msra.mxu1 %v3170_v16  ;;  %s3463_s7 = smov 24  }
  0x75   :  { %2868 = vmatprep.subr.bf16.mxu1 %v3449_v15 }
  0x89   :  { %282 = vrot.lane.b32.xlu0 %v280_v21, %s3451_s0 }
  0xfc   :  { %v157_v4 = vpop.xlane.xlu0 %156 }
  0xfd   :  { %v162_v5 = vmul.f32 0.03125, %v157_v4 }
  0xff   :  { %v164_v6 = vsub.f32 %v3650_v0, %v162_v5 }
 0x100   :  { %v160_v7 = vpop.xlane.xlu0 %159 }
 0x101   :  { %v163_v8 = vmul.f32 0.03125, %v160_v7  ;;  %v166_v9 = vmul.f32 %v164_v6, %v164_v6  ;;  %v200_v42 = vmul.f32 %v199_v39, %v164_v6 }
 0x103   :  { %v165_v10 = vsub.f32 %v3655_v1, %v163_v8  ;;  %v168_v11 = vsel %vm154_vm0, %v166_v9, 0.0  ;;  %v3722_v8 = vld [vmem:[%s4244_s2] sm:$0xff] }
 0x104   :  { %169 = vadd.xlane.f32.xlu1 %v168_v11  ;;  %v283_v51 = vpop.permute.xlu0 %282  ;;  %vm136_vm7 = vcmp.eq.f32.partialorder %v3722_v8, 0.0 }
 0x105   :  { %v167_v12 = vmul.f32 %v165_v10, %v165_v10  ;;  %v201_v43 = vmul.f32 %v199_v39, %v165_v10 }
 0x107   :  { %v171_v13 = vsel %vm154_vm0, %v167_v12, 0.0  ;;  %v3728_v12 = vld [vmem:[%s4244_s2 + $0x8] sm:$0xff]  ;;  %s3453_s2 = smov 88  }
 0x108   :  { %172 = vadd.xlane.f32.xlu1 %v171_v13  ;;  %vm137_vm8 = vcmp.eq.f32.partialorder %v3728_v12, 0.0 }
 0x191   :  { %v170_v22 = vpop.xlane.xlu1 %169 }
 0x192   :  { %v174_v23 = vmul.f32 0.032258064, %v170_v22 }
 0x194   :  { %3185 = vrsqrt.f32 %v174_v23  ;;  %vm178_vm2 = vcmp.eq.f32.partialorder %v174_v23, inf  ;;  %v181_v28 = vand.u32 2147483648, %v174_v23  ;;  %vm180_vm3 = vcmp.eq.f32.partialorder %v174_v23, 0.0 }
 0x195   :  { %v173_v24 = vpop.xlane.xlu1 %172 }
 0x196   :  { %v175_v25 = vmul.f32 0.032258064, %v173_v24 }
 0x198   :  { %3187 = vrsqrt.f32 %v175_v25  ;;  %vm185_vm4 = vcmp.eq.f32.partialorder %v175_v25, inf  ;;  %v188_v34 = vand.u32 2147483648, %v175_v25  ;;  %vm187_vm5 = vcmp.eq.f32.partialorder %v175_v25, 0.0 }
 0x19e   :  { %v3186_v26 = vpop.eup %3185 }
 0x19f   :  { %v177_v27 = vmul.f32 %v3186_v26, %v174_v23 }
 0x1a1   :  { %v179_v29 = vsel %vm178_vm2, %v174_v23, %v177_v27  ;;  %v290_v27 = vrot.slane %v3676_v20, %v206_v40 }
 0x1a2   :  { %v3188_v30 = vpop.eup %3187  ;;  %v182_v31 = vsel %vm180_vm3, %v181_v28, %v179_v29 }
 0x1a3   :  { %v190_v32 = vadd.f32 1e-06, %v182_v31  ;;  %v184_v33 = vmul.f32 %v3188_v30, %v175_v25 }
 0x1a5   :  { %3189 = vrcp.f32 %v190_v32  ;;  %v186_v35 = vsel %vm185_vm4, %v175_v25, %v184_v33 }
 0x1a6   :  { %v189_v36 = vsel %vm187_vm5, %v188_v34, %v186_v35 }
 0x1a7   :  { %v191_v37 = vadd.f32 1e-06, %v189_v36 }
 0x1a9   :  { %3191 = vrcp.f32 %v191_v37 }
 0x1af   :  { %v3190_v41 = vpop.eup %3189 }
 0x1b0   :  { %v202_v44 = vmul.f32 %v3190_v41, %v200_v42 }
 0x1b2   :  { %v208_v48 = vadd.f32 %v207_v45, %v202_v44 }
 0x1b3   :  { %v3192_v46 = vpop.eup %3191 }
 0x1b4   :  { %v203_v47 = vmul.f32 %v3192_v46, %v201_v43 }
 0x1b6   :  { %v209_v49 = vadd.f32 %v207_v45, %v203_v47 }
 0x1b8   :  { %v210_v50 = vpack.c.bf16 %v209_v49, %v208_v48 }
 0x1ba   :  { %2865 = vmatmul.mubr.msk.bf16.vlgmr.msra.gmra.mrb[0].mxu1 %vm154_vm0, %v210_v50 }
 0x1bb   :  { %2870 = vmatprep.mubr.msk.bf16.mxu1 %vm3450_vm1, %v3449_v15 }
 0x28d   :  { %v264_v52 = vpop.f32.mrb[0].mxu1 }
 0x28e   :  { %v285_v53 = vadd.f32 %v283_v51, %v264_v52  ;;  %v2866_v54 = vpop.f32.mrb[1].mxu1  ;;  %v275_v2 = vadd.f32 %v274_v61, %v264_v52 }
 0x28f   :  { %v267_v55 = vpop.f32.mrb[2].mxu1 }
 0x290   :  { %v3690_v56 = vpack.c.bf16 %v285_v53, %v285_v53  ;;  %v286_v57 = vadd.f32 %v283_v51, %v267_v55  ;;  %v2867_v58 = vpop.f32.mrb[3].mxu1  ;;  %v3706_v5 = vpack.c.bf16 %v275_v2, %v275_v2  ;;  %v276_v6 = vadd.f32 %v274_v61, %v267_v55 }
 0x292   :  { %304 = vrot.lane.b32.xlu1 %v3690_v56, %s3452_s11  ;;  %v3694_v59 = vpack.c.bf16 %v286_v57, %v286_v57  ;;  %v3713_v7 = vpack.c.bf16 %v276_v6, %v276_v6 }
 0x296   :  { %354 = vrot.lane.b32.xlu1 %v3694_v59, %s3452_s11 }
 0x304   :  { %v305_v62 = vpop.permute.xlu1 %304 }
 0x305   :  { %v311_v63 = vsel %vm306_vm6, %v305_v62, 0 }
 0x306   :  { %2869 = vmatpush3.bf16.xpose.msra.mxu1 %v311_v63 }
 0x307   :  { %2880 = vmatprep.subr.bf16.mxu1 %v3449_v15 }
 0x308   :  { %v355_v3 = vpop.permute.xlu1 %354 }
 0x309   :  { %v360_v4 = vsel %vm306_vm6, %v355_v3, 0 }
 0x30a   :  { %2875 = vmatpush3.bf16.xpose.msra.mxu0 %v360_v4 }
 0x30b   :  { %2886 = vmatprep.subr.bf16.mxu0 %v3449_v15 }
 0x30d   :  { %2871 = vmatmul.mubr.msk.bf16.vlgmr.msra.gmra.mrb[4].mxu1 %vm306_vm6, %v3706_v5 }
 0x30e   :  { %2882 = vmatprep.mubr.msk.bf16.mxu1 %vm3450_vm1, %v3449_v15 }
 0x311   :  { %2877 = vmatmul.mubr.msk.bf16.vlgmr.msra.gmra.mrb[0].mxu0 %vm306_vm6, %v3713_v7 }
 0x312   :  { %2888 = vmatprep.mubr.msk.bf16.mxu0 %vm3450_vm1, %v3449_v15 }
 0x3e0   :  { %v347_v9 = vpop.f32.mrb[4].mxu1 }
 0x3e1   :  { %v402_v10 = vmul.f32 0.35355338, %v347_v9  ;;  %v2872_v11 = vpop.f32.mrb[5].mxu1 }
 0x3e2   :  { %v350_v13 = vpop.f32.mrb[6].mxu1 }
 0x3e3   :  { %v2873_v14 = vpop.f32.mrb[7].mxu1  ;;  %v404_v16 = vsel %vm136_vm7, -1e+09, %v402_v10 }
 0x3e4   :  { %v396_v17 = vpop.f32.mrb[0].mxu0  ;;  %v406_v19 = vsel %vm306_vm6, %v404_v16, -inf }
 0x3e5   :  { %v403_v21 = vmul.f32 0.35355338, %v396_v17  ;;  %v2878_v22 = vpop.f32.mrb[1].mxu0  ;;  %407 = vmax.xlane.f32.xlu1 %v406_v19 }
 0x3e6   :  { %v399_v23 = vpop.f32.mrb[2].mxu0 }
 0x3e7   :  { %v2879_v24 = vpop.f32.mrb[3].mxu0  ;;  %v405_v25 = vsel %vm137_vm8, -1e+09, %v403_v21 }
 0x3e8   :  { %v409_v26 = vsel %vm306_vm6, %v405_v25, -inf }
 0x3e9   :  { %410 = vmax.xlane.f32.xlu0 %v409_v26 }
 0x3ff   :  { %292 = vrot.lane.b32.xlu0 %v290_v27, %s3441_s20 }
 0x472   :  { %v408_v34 = vpop.xlane.xlu1 %407 }
 0x473   :  { %v412_v35 = vsub.f32 %v404_v16, %v408_v34 }
 0x475   :  { %v414_v36 = vmul.f32 1.442695, %v412_v35 }
 0x476   :  { %v411_v28 = vpop.xlane.xlu0 %410 }
 0x477   :  { %v413_v37 = vsub.f32 %v405_v25, %v411_v28  ;;  %3193 = vpow2.f32 %v414_v36 }
 0x479   :  { %v416_v39 = vmul.f32 1.442695, %v413_v37 }
 0x47a   :  { %v293_v29 = vpop.permute.xlu0 %292 }
 0x47b   :  { %v295_v30 = vadd.f32 %v293_v29, %v264_v52  ;;  %v296_v31 = vadd.f32 %v293_v29, %v267_v55  ;;  %3195 = vpow2.f32 %v416_v39 }
 0x47d   :  { %v3741_v32 = vpack.c.bf16 %v295_v30, %v295_v30  ;;  %v3743_v33 = vpack.c.bf16 %v296_v31, %v296_v31 }
 0x47f   :  { %481 = vrot.lane.b32.xlu0 %v3743_v33, %s3441_s20  ;;  %431 = vrot.lane.b32.xlu1 %v3741_v32, %s3441_s20  ;;  %s3455_s20 = smov 56  }
 0x481   :  { %v3194_v40 = vpop.eup %3193 }
 0x482   :  { %v418_v41 = vsel %vm306_vm6, %v3194_v40, 0.0 }
 0x483   :  { %532 = vrot.lane.b32.xlu0 %v3690_v56, %s3453_s2 }
 0x485   :  { %v3196_v42 = vpop.eup %3195 }
 0x486   :  { %v421_v43 = vsel %vm306_vm6, %v3196_v42, 0.0 }
 0x487   :  { %530 = vrot.lane.b32.xlu0 %v3706_v5, %s3454_s19 }
 0x4a3   :  { %419 = vadd.xlane.f32.xlu1 %v418_v41 }
 0x4a7   :  { %422 = vadd.xlane.f32.xlu1 %v421_v43 }
 0x4b8   :  { %583 = vrot.lane.b32.xlu1 %v3694_v59, %s3453_s2 }
 0x4bc   :  { %581 = vrot.lane.b32.xlu1 %v3713_v7, %s3454_s19 }
 0x4f1   :  { %v482_v44 = vpop.permute.xlu0 %481  ;;  %v432_v45 = vpop.permute.xlu1 %431 }
 0x4f2   :  { %v487_v46 = vsel %vm436_vm9, %v482_v44, 0  ;;  %v438_v47 = vsel %vm436_vm9, %v432_v45, 0 }
 0x4f3   :  { %2881 = vmatpush3.bf16.msra.mxu1 %v438_v47  ;;  %2887 = vmatpush3.bf16.msra.mxu0 %v487_v46 }
 0x4f4   :  { %2892 = vmatprep.subr.bf16.mxu1 %v3449_v15  ;;  %2898 = vmatprep.subr.bf16.mxu0 %v3449_v15 }
 0x4f5   :  { %v533_v52 = vpop.permute.xlu0 %532 }
 0x4f6   :  { %v538_v55 = vsel %vm306_vm6, %v533_v52, 0 }
 0x4f9   :  { %v531_v63 = vpop.permute.xlu0 %530 }
 0x530   :  { %v420_v48 = vpop.xlane.xlu1 %419 }
 0x531   :  { %3197 = vrcp.f32 %v420_v48 }
 0x534   :  { %v423_v49 = vpop.xlane.xlu1 %422 }
 0x535   :  { %3199 = vrcp.f32 %v423_v49 }
 0x538   :  { %v584_v58 = vpop.permute.xlu1 %583 }
 0x539   :  { %v589_v62 = vsel %vm306_vm6, %v584_v58, 0 }
 0x53b   :  { %v3198_v50 = vpop.eup %3197 }
 0x53c   :  { %v426_v51 = vmul.f32 %v3198_v50, %v3194_v40  ;;  %v582_v2 = vpop.permute.xlu1 %581 }
 0x53e   :  { %v428_v53 = vpack.c.bf16 %v426_v51, %v426_v51 }
 0x53f   :  { %v3200_v54 = vpop.eup %3199 }
 0x540   :  { %v427_v57 = vmul.f32 %v3200_v54, %v3196_v42  ;;  %2883 = vmatmul.mubr.msk.bf16.vlgmr.msra.gmra.mrb[8].mxu1 %vm306_vm6, %v428_v53 }
 0x541   :  { %2893 = vmatpush3.bf16.xpose.msra.mxu1 %v538_v55  ;;  %2894 = vmatprep.mubr.msk.bf16.mxu1 %vm3450_vm1, %v3449_v15 }
 0x542   :  { %v429_v61 = vpack.c.bf16 %v427_v57, %v427_v57  ;;  %2904 = vmatprep.subr.bf16.mxu1 %v3449_v15 }
 0x544   :  { %2889 = vmatmul.mubr.msk.bf16.vlgmr.msra.gmra.mrb[4].mxu0 %vm306_vm6, %v429_v61 }
 0x545   :  { %2899 = vmatpush3.bf16.xpose.msra.mxu0 %v589_v62  ;;  %2900 = vmatprep.mubr.msk.bf16.mxu0 %vm3450_vm1, %v3449_v15 }
 0x546   :  { %2910 = vmatprep.subr.bf16.mxu0 %v3449_v15 }
 0x548   :  { %2895 = vmatmul.mubr.msk.bf16.vlgmr.msra.gmra.mrb[12].mxu1 %vm306_vm6, %v531_v63 }
 0x549   :  { %2906 = vmatprep.mubr.msk.bf16.mxu1 %vm3450_vm1, %v3449_v15 }
 0x54c   :  { %2901 = vmatmul.mubr.msk.bf16.vlgmr.msra.gmra.mrb[8].mxu0 %vm306_vm6, %v582_v2 }
 0x54d   :  { %2912 = vmatprep.mubr.msk.bf16.mxu0 %vm3450_vm1, %v3449_v15 }
 0x613   :  { %v3779_v3 = vpop.f32.mrb[8].mxu1 }
 0x614   :  { %v2884_v4 = vpop.f32.mrb[9].mxu1 }
 0x615   :  { %v477_v6 = vpop.f32.mrb[10].mxu1 }
 0x616   :  { %v2885_v9 = vpop.f32.mrb[11].mxu1 }
 0x617   :  { %v3781_v10 = vpop.f32.mrb[4].mxu0 }
 0x618   :  { %v2890_v11 = vpop.f32.mrb[5].mxu0 }
 0x619   :  { %v526_v13 = vpop.f32.mrb[6].mxu0 }
 0x61a   :  { %v2891_v14 = vpop.f32.mrb[7].mxu0 }
 0x61b   :  { %v574_v16 = vpop.f32.mrb[12].mxu1 }
 0x61c   :  { %v631_v17 = vmul.f32 0.35355338, %v574_v16  ;;  %v2896_v19 = vpop.f32.mrb[13].mxu1 }
 0x61d   :  { %v577_v21 = vpop.f32.mrb[14].mxu1 }
 0x61e   :  { %v2897_v22 = vpop.f32.mrb[15].mxu1  ;;  %v633_v23 = vsel %vm136_vm7, -1e+09, %v631_v17 }
 0x61f   :  { %v625_v24 = vpop.f32.mrb[8].mxu0  ;;  %v635_v25 = vsel %vm306_vm6, %v633_v23, -inf }
 0x620   :  { %v632_v26 = vmul.f32 0.35355338, %v625_v24  ;;  %v2902_v27 = vpop.f32.mrb[9].mxu0  ;;  %636 = vmax.xlane.f32.xlu0 %v635_v25 }
 0x621   :  { %v628_v28 = vpop.f32.mrb[10].mxu0 }
 0x622   :  { %v2903_v29 = vpop.f32.mrb[11].mxu0  ;;  %v634_v30 = vsel %vm137_vm8, -1e+09, %v632_v26 }
 0x623   :  { %v638_v31 = vsel %vm306_vm6, %v634_v30, -inf }
 0x624   :  { %639 = vmax.xlane.f32.xlu1 %v638_v31 }
 0x635   :  { %707 = vrot.lane.b32.xlu1 %v3743_v33, %s3455_s20 }
 0x639   :  { %757 = vrot.lane.b32.xlu1 %v3690_v56, %s3456_s23 }
 0x63d   :  { %807 = vrot.lane.b32.xlu1 %v3694_v59, %s3456_s23 }
 0x641   :  { %805 = vrot.lane.b32.xlu1 %v3713_v7, %s3457_s24 }
 0x6ad   :  { %v637_v34 = vpop.xlane.xlu0 %636 }
 0x6ae   :  { %v641_v35 = vsub.f32 %v633_v23, %v637_v34 }
 0x6b0   :  { %v643_v36 = vmul.f32 1.442695, %v641_v35 }
 0x6b1   :  { %v640_v37 = vpop.xlane.xlu1 %639 }
 0x6b2   :  { %3201 = vpow2.f32 %v643_v36  ;;  %v642_v39 = vsub.f32 %v634_v30, %v640_v37 }
 0x6b4   :  { %v645_v40 = vmul.f32 1.442695, %v642_v39 }
 0x6b5   :  { %v708_v41 = vpop.permute.xlu1 %707 }
 0x6b6   :  { %3203 = vpow2.f32 %v645_v40  ;;  %v713_v42 = vsel %vm436_vm9, %v708_v41, 0 }
 0x6b7   :  { %2911 = vmatpush3.bf16.msra.mxu0 %v713_v42 }
 0x6b8   :  { %2922 = vmatprep.subr.bf16.mxu0 %v3449_v15 }
 0x6b9   :  { %v758_v52 = vpop.permute.xlu1 %757 }
 0x6ba   :  { %v763_v61 = vsel %vm306_vm6, %v758_v52, 0 }
 0x6bc   :  { %v3202_v43 = vpop.eup %3201 }
 0x6bd   :  { %v647_v44 = vsel %vm306_vm6, %v3202_v43, 0.0  ;;  %v808_v58 = vpop.permute.xlu1 %807 }
 0x6be   :  { %648 = vadd.xlane.f32.xlu0 %v647_v44  ;;  %v813_v63 = vsel %vm306_vm6, %v808_v58, 0 }
 0x6c0   :  { %v3204_v45 = vpop.eup %3203 }
 0x6c1   :  { %v650_v46 = vsel %vm306_vm6, %v3204_v45, 0.0  ;;  %v806_v4 = vpop.permute.xlu1 %805 }
 0x6c2   :  { %651 = vadd.xlane.f32.xlu0 %v650_v46 }
 0x6d8   :  { %659 = vrot.lane.b32.xlu0 %v3741_v32, %s3455_s20 }
 0x6dc   :  { %755 = vrot.lane.b32.xlu0 %v3706_v5, %s3457_s24 }
 0x74b   :  { %v649_v47 = vpop.xlane.xlu0 %648 }
 0x74c   :  { %3205 = vrcp.f32 %v649_v47 }
 0x74f   :  { %v652_v48 = vpop.xlane.xlu0 %651 }
 0x750   :  { %3207 = vrcp.f32 %v652_v48 }
 0x753   :  { %v660_v49 = vpop.permute.xlu0 %659 }
 0x754   :  { %v665_v50 = vsel %vm436_vm9, %v660_v49, 0 }
 0x755   :  { %2905 = vmatpush3.bf16.msra.mxu1 %v665_v50 }
 0x756   :  { %v3206_v51 = vpop.eup %3205  ;;  %2916 = vmatprep.subr.bf16.mxu1 %v3449_v15 }
 0x757   :  { %v655_v53 = vmul.f32 %v3206_v51, %v3202_v43  ;;  %v756_v2 = vpop.permute.xlu0 %755 }
 0x759   :  { %v657_v54 = vpack.c.bf16 %v655_v53, %v655_v53 }
 0x75a   :  { %v3208_v55 = vpop.eup %3207 }
 0x75b   :  { %v656_v57 = vmul.f32 %v3208_v55, %v3204_v45  ;;  %2907 = vmatmul.mubr.msk.bf16.vlgmr.msra.gmra.mrb[16].mxu1 %vm306_vm6, %v657_v54 }
 0x75c   :  { %2918 = vmatprep.mubr.msk.bf16.mxu1 %vm3450_vm1, %v3449_v15 }
 0x75d   :  { %v658_v62 = vpack.c.bf16 %v656_v57, %v656_v57 }
 0x75e   :  { %2917 = vmatpush3.bf16.xpose.msra.mxu1 %v763_v61 }
 0x75f   :  { %2913 = vmatmul.mubr.msk.bf16.vlgmr.msra.gmra.mrb[12].mxu0 %vm306_vm6, %v658_v62  ;;  %2928 = vmatprep.subr.bf16.mxu1 %v3449_v15 }
 0x760   :  { %2923 = vmatpush3.bf16.xpose.msra.mxu0 %v813_v63  ;;  %2924 = vmatprep.mubr.msk.bf16.mxu0 %vm3450_vm1, %v3449_v15 }
 0x761   :  { %2934 = vmatprep.subr.bf16.mxu0 %v3449_v15 }
 0x765   :  { %2919 = vmatmul.mubr.msk.bf16.vlgmr.msra.gmra.mrb[20].mxu1 %vm306_vm6, %v756_v2 }
 0x766   :  { %2930 = vmatprep.mubr.msk.bf16.mxu1 %vm3450_vm1, %v3449_v15 }
 0x767   :  { %2925 = vmatmul.mubr.msk.bf16.vlgmr.msra.gmra.mrb[16].mxu0 %vm306_vm6, %v806_v4 }
 0x768   :  { %2936 = vmatprep.mubr.msk.bf16.mxu0 %vm3450_vm1, %v3449_v15 }
 0x82e   :  { %v3821_v6 = vpop.f32.mrb[16].mxu1 }
 0x82f   :  { %v2908_v9 = vpop.f32.mrb[17].mxu1 }
 0x830   :  { %v704_v11 = vpop.f32.mrb[18].mxu1 }
 0x831   :  { %v2909_v13 = vpop.f32.mrb[19].mxu1 }
 0x832   :  { %v3823_v14 = vpop.f32.mrb[12].mxu0 }
 0x833   :  { %v3139_v16 = vpack.i.bf16 %v3823_v14, %v3821_v6  ;;  %v2914_v17 = vpop.f32.mrb[13].mxu0 }
 0x834   :  { %v752_v19 = vpop.f32.mrb[14].mxu0 }
 0x835   :  { %v2915_v21 = vpop.f32.mrb[15].mxu0 }
 0x838   :  { %v799_v22 = vpop.f32.mrb[20].mxu1 }
 0x839   :  { %v855_v23 = vmul.f32 0.35355338, %v799_v22  ;;  %v2920_v24 = vpop.f32.mrb[21].mxu1 }
 0x83a   :  { %v802_v25 = vpop.f32.mrb[22].mxu1  ;;  %v849_v26 = vpop.f32.mrb[16].mxu0 }
 0x83b   :  { %v856_v27 = vmul.f32 0.35355338, %v849_v26  ;;  %v2921_v28 = vpop.f32.mrb[23].mxu1  ;;  %v2926_v29 = vpop.f32.mrb[17].mxu0  ;;  %v857_v30 = vsel %vm136_vm7, -1e+09, %v855_v23 }
 0x83c   :  { %v852_v31 = vpop.f32.mrb[18].mxu0  ;;  %v859_v34 = vsel %vm306_vm6, %v857_v30, -inf }
 0x83d   :  { %v2927_v35 = vpop.f32.mrb[19].mxu0  ;;  %860 = vmax.xlane.f32.xlu0 %v859_v34  ;;  %v858_v36 = vsel %vm137_vm8, -1e+09, %v856_v27 }
 0x83e   :  { %v862_v37 = vsel %vm306_vm6, %v858_v36, -inf }
 0x83f   :  { %863 = vmax.xlane.f32.xlu1 %v862_v37 }
 0x850   :  { %931 = vrot.lane.b32.xlu1 %v3743_v33, %s3458_s25 }
 0x854   :  { %981 = vrot.lane.b32.xlu1 %v3690_v56, %s3459_s4 }
 0x858   :  { %1031 = vrot.lane.b32.xlu1 %v3694_v59, %s3459_s4 }
 0x85c   :  { %1029 = vrot.lane.b32.xlu1 %v3713_v7, %s3460_s18 }
 0x8ca   :  { %v861_v39 = vpop.xlane.xlu0 %860 }
 0x8cb   :  { %v865_v40 = vsub.f32 %v857_v30, %v861_v39 }
 0x8cc   :  { %v864_v41 = vpop.xlane.xlu1 %863 }
 0x8cd   :  { %v867_v42 = vmul.f32 1.442695, %v865_v40  ;;  %v866_v43 = vsub.f32 %v858_v36, %v864_v41 }
 0x8cf   :  { %3209 = vpow2.f32 %v867_v42  ;;  %v869_v44 = vmul.f32 1.442695, %v866_v43 }
 0x8d0   :  { %v932_v45 = vpop.permute.xlu1 %931 }
 0x8d1   :  { %3211 = vpow2.f32 %v869_v44  ;;  %v937_v46 = vsel %vm436_vm9, %v932_v45, 0 }
 0x8d2   :  { %2935 = vmatpush3.bf16.msra.mxu0 %v937_v46 }
 0x8d3   :  { %2946 = vmatprep.subr.bf16.mxu0 %v3449_v15 }
 0x8d4   :  { %v982_v53 = vpop.permute.xlu1 %981 }
 0x8d8   :  { %v1032_v61 = vpop.permute.xlu1 %1031 }
 0x8d9   :  { %v3210_v56 = vpop.eup %3209  ;;  %v1037_v63 = vsel %vm306_vm6, %v1032_v61, 0 }
 0x8da   :  { %v871_v59 = vsel %vm306_vm6, %v3210_v56, 0.0 }
 0x8db   :  { %v3212_v47 = vpop.eup %3211  ;;  %872 = vadd.xlane.f32.xlu0 %v871_v59 }
 0x8dc   :  { %v874_v7 = vsel %vm306_vm6, %v3212_v47, 0.0  ;;  %v1030_v4 = vpop.permute.xlu1 %1029 }
 0x8df   :  { %875 = vadd.xlane.f32.xlu0 %v874_v7 }
 0x8f5   :  { %883 = vrot.lane.b32.xlu0 %v3741_v32, %s3458_s25 }
 0x8f9   :  { %979 = vrot.lane.b32.xlu0 %v3706_v5, %s3460_s18  ;;  %v987_v5 = vsel %vm306_vm6, %v982_v53, 0 }
 0x968   :  { %v873_v48 = vpop.xlane.xlu0 %872 }
 0x969   :  { %3213 = vrcp.f32 %v873_v48 }
 0x96c   :  { %v876_v49 = vpop.xlane.xlu0 %875 }
 0x96d   :  { %3215 = vrcp.f32 %v876_v49 }
 0x970   :  { %v884_v50 = vpop.permute.xlu0 %883 }
 0x971   :  { %v889_v51 = vsel %vm436_vm9, %v884_v50, 0 }
 0x972   :  { %2929 = vmatpush3.bf16.msra.mxu1 %v889_v51 }
 0x973   :  { %v3214_v52 = vpop.eup %3213  ;;  %2940 = vmatprep.subr.bf16.mxu1 %v3449_v15 }
 0x974   :  { %v879_v54 = vmul.f32 %v3214_v52, %v3210_v56  ;;  %v980_v2 = vpop.permute.xlu0 %979 }
 0x976   :  { %v881_v55 = vpack.c.bf16 %v879_v54, %v879_v54  ;;  %v3171_v54 = vld [vmem:[#allocation5] sm:$0xff]  }
 0x977   :  { %v3216_v57 = vpop.eup %3215 }
 0x978   :  { %v880_v58 = vmul.f32 %v3216_v57, %v3212_v47  ;;  %2931 = vmatmul.mubr.msk.bf16.vlgmr.msra.gmra.mrb[24].mxu1 %vm306_vm6, %v881_v55  ;;  %v3172_v55 = vld [vmem:[#allocation5 + $0x8] sm:$0xff]  }
 0x979   :  { %2942 = vmatprep.mubr.msk.bf16.mxu1 %vm3450_vm1, %v3449_v15 }
 0x97a   :  { %v882_v62 = vpack.c.bf16 %v880_v58, %v880_v58 }
 0x97b   :  { %2941 = vmatpush3.bf16.xpose.msra.mxu1 %v987_v5 }
 0x97c   :  { %2937 = vmatmul.mubr.msk.bf16.vlgmr.msra.gmra.mrb[20].mxu0 %vm306_vm6, %v882_v62  ;;  %2952 = vmatprep.subr.bf16.mxu1 %v3449_v15 }
 0x97d   :  { %2947 = vmatpush3.bf16.xpose.msra.mxu0 %v1037_v63  ;;  %2948 = vmatprep.mubr.msk.bf16.mxu0 %vm3450_vm1, %v3449_v15 }
 0x97e   :  { %2958 = vmatprep.subr.bf16.mxu0 %v3449_v15 }
 0x982   :  { %2943 = vmatmul.mubr.msk.bf16.vlgmr.msra.gmra.mrb[28].mxu1 %vm306_vm6, %v980_v2 }
 0x983   :  { %2954 = vmatprep.mubr.msk.bf16.mxu1 %vm3450_vm1, %v3449_v15 }
 0x984   :  { %2949 = vmatmul.mubr.msk.bf16.vlgmr.msra.gmra.mrb[24].mxu0 %vm306_vm6, %v1030_v4 }
 0x985   :  { %2960 = vmatprep.mubr.msk.bf16.mxu0 %vm3450_vm1, %v3449_v15 }
 0xa4b   :  { %v925_v9 = vpop.f32.mrb[24].mxu1 }
 0xa4c   :  { %v2932_v11 = vpop.f32.mrb[25].mxu1 }
 0xa4d   :  { %v928_v13 = vpop.f32.mrb[26].mxu1 }
 0xa4e   :  { %v2933_v17 = vpop.f32.mrb[27].mxu1 }
 0xa4f   :  { %v973_v19 = vpop.f32.mrb[20].mxu0 }
 0xa50   :  { %v3144_v21 = vpack.i.bf16 %v973_v19, %v925_v9  ;;  %v2938_v22 = vpop.f32.mrb[21].mxu0 }
 0xa51   :  { %v976_v23 = vpop.f32.mrb[22].mxu0 }
 0xa52   :  { %v2939_v24 = vpop.f32.mrb[23].mxu0 }
 0xa55   :  { %v1023_v25 = vpop.f32.mrb[28].mxu1 }
 0xa56   :  { %v1079_v26 = vmul.f32 0.35355338, %v1023_v25  ;;  %v2944_v27 = vpop.f32.mrb[29].mxu1 }
 0xa57   :  { %v1026_v28 = vpop.f32.mrb[30].mxu1  ;;  %v1073_v29 = vpop.f32.mrb[24].mxu0 }
 0xa58   :  { %v1080_v30 = vmul.f32 0.35355338, %v1073_v29  ;;  %v2945_v31 = vpop.f32.mrb[31].mxu1  ;;  %v2950_v34 = vpop.f32.mrb[25].mxu0  ;;  %v1081_v35 = vsel %vm136_vm7, -1e+09, %v1079_v26 }
 0xa59   :  { %v1076_v36 = vpop.f32.mrb[26].mxu0  ;;  %v1083_v37 = vsel %vm306_vm6, %v1081_v35, -inf }
 0xa5a   :  { %v2951_v39 = vpop.f32.mrb[27].mxu0  ;;  %1084 = vmax.xlane.f32.xlu0 %v1083_v37  ;;  %v1082_v40 = vsel %vm137_vm8, -1e+09, %v1080_v30 }
 0xa5b   :  { %v1086_v41 = vsel %vm306_vm6, %v1082_v40, -inf }
 0xa5c   :  { %1087 = vmax.xlane.f32.xlu1 %v1086_v41 }
 0xa6d   :  { %1155 = vrot.lane.b32.xlu1 %v3743_v33, %s3461_s27 }
 0xa71   :  { %3140 = vrot.lane.b32.xlu1 %v3139_v16, %s3448_s21 }
 0xa75   :  { %3145 = vrot.lane.b32.xlu1 %v3144_v21, %s3462_s30 }
 0xae7   :  { %v1085_v8 = vpop.xlane.xlu0 %1084 }
 0xae8   :  { %v1089_v42 = vsub.f32 %v1081_v35, %v1085_v8 }
 0xae9   :  { %v1088_v43 = vpop.xlane.xlu1 %1087 }
 0xaea   :  { %v1091_v44 = vmul.f32 1.442695, %v1089_v42  ;;  %v1090_v12 = vsub.f32 %v1082_v40, %v1088_v43 }
 0xaec   :  { %3217 = vpow2.f32 %v1091_v44  ;;  %v1093_v45 = vmul.f32 1.442695, %v1090_v12 }
 0xaed   :  { %v1156_v46 = vpop.permute.xlu1 %1155 }
 0xaee   :  { %3219 = vpow2.f32 %v1093_v45  ;;  %v1161_v56 = vsel %vm436_vm9, %v1156_v46, 0 }
 0xaef   :  { %2959 = vmatpush3.bf16.msra.mxu0 %v1161_v56 }
 0xaf0   :  { %2972 = vmatprep.subr.bf16.mxu0 %v3449_v15 }
 0xaf1   :  { %v3141_v11 = vpop.permute.xlu1 %3140 }
 0xaf2   :  { %v3143_v17 = vunpack.i.h.bf16 %v3141_v11  ;;  %v3142_v19 = vunpack.i.l.bf16 %v3141_v11 }
 0xaf4   :  { %v1228_v24 = vsel %vm306_vm6, %v3781_v10, %v3143_v17  ;;  %v1227_v25 = vsel %vm306_vm6, %v3779_v3, %v3142_v19  ;;  %v1242_v10 = vsub.s32 3, %v3673_v18  ;;  %v1352_v17 = vsub.s32 4, %v3673_v18 }
 0xaf5   :  { %v3146_v13 = vpop.permute.xlu1 %3145 }
 0xaf6   :  { %v3218_v33 = vpop.eup %3217  ;;  %v3148_v21 = vunpack.i.h.bf16 %v3146_v13  ;;  %v3147_v22 = vunpack.i.l.bf16 %v3146_v13  ;;  %v1243_v3 = vrot.slane %v3676_v20, %v1242_v10  ;;  %v3938_v13 = vrot.slane %v3680_v38, %v1242_v10 }
 0xaf7   :  { %v1095_v6 = vsel %vm306_vm6, %v3218_v33, 0.0 }
 0xaf8   :  { %v3220_v14 = vpop.eup %3219  ;;  %1096 = vadd.xlane.f32.xlu0 %v1095_v6  ;;  %v1231_v28 = vsel %vm1229_vm10, %v1228_v24, %v3148_v21  ;;  %v1230_v29 = vsel %vm1229_vm10, %v1227_v25, %v3147_v22  ;;  %v3943_v22 = vrot.slane %v3680_v38, %v1352_v17 }
 0xaf9   :  { %v1098_v16 = vsel %vm306_vm6, %v3220_v14, 0.0 }
 0xafc   :  { %1099 = vadd.xlane.f32.xlu0 %v1098_v16  ;;  %v3173_v16 = vld [vmem:[#allocation8] sm:$0xff]  }
 0xb12   :  { %1107 = vrot.lane.b32.xlu0 %v3741_v32, %s3461_s27 }
 0xb85   :  { %v1097_v59 = vpop.xlane.xlu0 %1096 }
 0xb86   :  { %3221 = vrcp.f32 %v1097_v59  ;;  %v3174_v59 = vld [vmem:[#allocation8 + $0x8] sm:$0xff]  }
 0xb89   :  { %v1100_v47 = vpop.xlane.xlu0 %1099 }
 0xb8a   :  { %3223 = vrcp.f32 %v1100_v47  ;;  %v132_v47 = vld [vmem:[%s4243_s1] sm:$0xff] }
 0xb8d   :  { %v1108_v7 = vpop.permute.xlu0 %1107 }
 0xb8e   :  { %v1113_v48 = vsel %vm436_vm9, %v1108_v7, 0  ;;  %v133_v7 = vld [vmem:[%s4243_s1 + $0x8] sm:$0xff] }
 0xb8f   :  { %2953 = vmatpush3.bf16.msra.mxu1 %v1113_v48  ;;  %v3175_v48 = vld [vmem:[#allocation7] sm:$0xff]  }
 0xb90   :  { %v3222_v49 = vpop.eup %3221  ;;  %2964 = vmatprep.subr.bf16.mxu1 %v3449_v15 }
 0xb91   :  { %v1103_v50 = vmul.f32 %v3222_v49, %v3218_v33  ;;  %v1421_v49 = vpack.c.bf16 %v133_v7, %v132_v47 }
 0xb93   :  { %v1105_v51 = vpack.c.bf16 %v1103_v50, %v1103_v50  ;;  %v3176_v50 = vld [vmem:[#allocation7 + $0x8] sm:$0xff]  }
 0xb94   :  { %v3224_v52 = vpop.eup %3223 }
 0xb95   :  { %v1104_v53 = vmul.f32 %v3224_v52, %v3220_v14  ;;  %2955 = vmatmul.mubr.msk.bf16.vlgmr.msra.gmra.mrb[32].mxu1 %vm306_vm6, %v1105_v51 }
 0xb96   :  { %2968 = vmatprep.mubr.msk.bf16.mxu1 %vm3450_vm1, %v3449_v15  ;;  %2965 = vmatpush3.bf16.msra.mxu1 %v3171_v54 }
 0xb97   :  { %v1106_v32 = vpack.c.bf16 %v1104_v53, %v1104_v53  ;;  %2966 = vmatprep.subr.bf16.mxu1 %v3449_v15 }
 0xb99   :  { %2961 = vmatmul.mubr.msk.bf16.vlgmr.msra.gmra.mrb[28].mxu0 %vm306_vm6, %v1106_v32 }
 0xb9a   :  { %2976 = vmatprep.mubr.msk.bf16.mxu0 %vm3450_vm1, %v3449_v15  ;;  %2967 = vmatpush3.bf16.msra.mxu1 %v3172_v55 }
 0xb9b   :  { %2980 = vmatprep.subr.bf16.mxu1 %v3449_v15  ;;  %2973 = vmatpush3.bf16.msra.mxu0 %v3175_v48 }
 0xb9c   :  { %2974 = vmatprep.subr.bf16.mxu0 %v3449_v15 }
 0xb9f   :  { %2975 = vmatpush3.bf16.msra.mxu0 %v3176_v50 }
 0xba0   :  { %2988 = vmatprep.subr.bf16.mxu0 %v3449_v15 }
 0xc68   :  { %v1149_v57 = vpop.f32.mrb[32].mxu1 }
 0xc69   :  { %v2956_v58 = vpop.f32.mrb[33].mxu1 }
 0xc6a   :  { %v1152_v61 = vpop.f32.mrb[34].mxu1 }
 0xc6b   :  { %v2957_v5 = vpop.f32.mrb[35].mxu1 }
 0xc6c   :  { %v1197_v62 = vpop.f32.mrb[28].mxu0 }
 0xc6d   :  { %v3149_v63 = vpack.i.bf16 %v1197_v62, %v1149_v57  ;;  %v2962_v2 = vpop.f32.mrb[29].mxu0 }
 0xc6e   :  { %v1200_v4 = vpop.f32.mrb[30].mxu0 }
 0xc6f   :  { %v2963_v9 = vpop.f32.mrb[31].mxu0  ;;  %3150 = vrot.lane.b32.xlu0 %v3149_v63, %s3463_s7 }
 0xce1   :  { %v3151_v23 = vpop.permute.xlu0 %3150 }
 0xce2   :  { %v3153_v26 = vunpack.i.h.bf16 %v3151_v23  ;;  %v3152_v27 = vunpack.i.l.bf16 %v3151_v23 }
 0xce4   :  { %v1234_v30 = vsel %vm1232_vm11, %v1231_v28, %v3153_v26  ;;  %v1233_v31 = vsel %vm1232_vm11, %v1230_v29, %v3152_v27 }
 0xce5   :  { %v1235_v34 = vpack.c.bf16 %v1234_v30, %v1233_v31  ;;  %v1484_v30 = vsub.s32 5, %v3673_v18  ;;  %v3952_v31 = vld [vmem:[#allocation11] sm:$0xff] }
 0xce7   :  { %2969 = vmatmul.mubr.msk.bf16.vlgmr.msra.gmra.mrb[36].mxu1 %vm154_vm0, %v1235_v34  ;;  %v1485_v38 = vrot.slane %v3952_v31, %v1484_v30 }
 0xce8   :  { %2984 = vmatprep.mubr.msk.bf16.mxu1 %vm3450_vm1, %v3449_v15  ;;  %2981 = vmatpush3.bf16.msra.mxu1 %v3173_v16  ;;  %v3464_v16 = vmov 0  }
 0xce9   :  { %2982 = vmatprep.subr.bf16.mxu1 %v3449_v15 }
 0xcec   :  { %2983 = vmatpush3.bf16.msra.mxu1 %v3174_v59 }
 0xced   :  { %2994 = vmatprep.subr.bf16.mxu1 %v3449_v15 }
 0xcef   :  { %2985 = vmatmul.mubr.msk.bf16.vlgmr.msra.gmra.mrb[40].mxu1 %vm154_vm0, %v1421_v49 }
 0xcf0   :  { %2996 = vmatprep.mubr.msk.bf16.mxu1 %vm3450_vm1, %v3449_v15 }
 0xdba   :  { %v1293_v35 = vpop.f32.mrb[36].mxu1 }
 0xdbb   :  { %v1294_v36 = vadd.f32 %v1293_v35, %v1243_v3  ;;  %v2970_v37 = vpop.f32.mrb[37].mxu1 }
 0xdbc   :  { %v1296_v39 = vpop.f32.mrb[38].mxu1 }
 0xdbd   :  { %v3909_v40 = vadd.f32 %v1294_v36, %v3650_v0  ;;  %v1297_v41 = vadd.f32 %v1296_v39, %v1243_v3  ;;  %v2971_v8 = vpop.f32.mrb[39].mxu1 }
 0xdbf   :  { %v3912_v42 = vadd.f32 %v1297_v41, %v3655_v1  ;;  %v1302_v43 = vsel %vm154_vm0, %v3909_v40, 0.0 }
 0xdc0   :  { %1303 = vadd.xlane.f32.xlu1 %v1302_v43 }
 0xdc1   :  { %v1305_v44 = vsel %vm154_vm0, %v3912_v42, 0.0 }
 0xdc2   :  { %1306 = vadd.xlane.f32.xlu0 %v1305_v44  ;;  %v3955_v34 = vpop.f32.mrb[40].mxu1  ;;  %v1364_v44 = vrot.slane %v3952_v31, %v1352_v17 }
 0xdc3   :  { %v1486_v10 = vadd.f32 %v1485_v38, %v3955_v34  ;;  %v2986_v3 = vpop.f32.mrb[41].mxu1 }
 0xdc4   :  { %v1478_v35 = vpop.f32.mrb[42].mxu1 }
 0xdc5   :  { %v3958_v36 = vpack.c.bf16 %v1486_v10, %v1486_v10  ;;  %v1487_v37 = vadd.f32 %v1485_v38, %v1478_v35  ;;  %v2987_v39 = vpop.f32.mrb[43].mxu1 }
 0xdc7   :  { %v3960_v41 = vpack.c.bf16 %v1487_v37, %v1487_v37  ;;  %v1508_v8 = vsel %vm306_vm6, %v3958_v36, 0 }
 0xdc9   :  { %v1554_v43 = vsel %vm306_vm6, %v3960_v41, 0 }
 0xdca   :  { %2995 = vmatpush3.bf16.xpose.msra.mxu1 %v1554_v43 }
 0xdcb   :  { %3006 = vmatprep.subr.bf16.mxu1 %v3449_v15 }
 0xe4d   :  { %v1304_v20 = vpop.xlane.xlu1 %1303 }
 0xe4e   :  { %v1308_v12 = vmul.f32 0.03125, %v1304_v20 }
 0xe4f   :  { %v1307_v45 = vpop.xlane.xlu0 %1306 }
 0xe50   :  { %v1310_v46 = vsub.f32 %v3909_v40, %v1308_v12  ;;  %v1309_v0 = vmul.f32 0.03125, %v1307_v45 }
 0xe52   :  { %v1311_v56 = vsub.f32 %v3912_v42, %v1309_v0  ;;  %v1312_v33 = vmul.f32 %v1310_v46, %v1310_v46  ;;  %v1346_v21 = vmul.f32 %v3938_v13, %v1310_v46 }
 0xe54   :  { %v1314_v1 = vsel %vm154_vm0, %v1312_v33, 0.0  ;;  %v1313_v6 = vmul.f32 %v1311_v56, %v1311_v56  ;;  %v1347_v23 = vmul.f32 %v3938_v13, %v1311_v56 }
 0xe55   :  { %1315 = vadd.xlane.f32.xlu0 %v1314_v1 }
 0xe56   :  { %v1317_v14 = vsel %vm154_vm0, %v1313_v6, 0.0  ;;  %v138_v6 = vld [vmem:[%s4245_s3] sm:$0x1] }
 0xe57   :  { %vm140_vm2 = vcmp.eq.f32.partialorder %v138_v6, 0.0 }
 0xe58   :  { %v142_v59 = vsel %vm140_vm2, 1, %v3464_v16 }
 0xe59   :  { %1318 = vadd.xlane.f32.xlu0 %v1317_v14  ;;  %v139_v14 = vld [vmem:[%s4245_s3 + $0x1] sm:$0x1]  ;;  %v147_v7 = vrot.slane %v142_v59, %v3699_v60 }
 0xe5a   :  { %vm141_vm3 = vcmp.eq.f32.partialorder %v139_v14, 0.0 }
 0xe5b   :  { %v143_v47 = vsel %vm141_vm3, 1, %v3464_v16  ;;  %vm3989_vm4 = vcmp.eq.s32.totalorder %v147_v7, 1 }
 0xe5c   :  { %v151_v48 = vrot.slane %v143_v47, %v3699_v60 }
 0xe5e   :  { %vm3993_vm5 = vcmp.eq.s32.totalorder %v151_v48, 1 }
 0xee2   :  { %v1316_v51 = vpop.xlane.xlu0 %1315 }
 0xee3   :  { %v1320_v52 = vmul.f32 0.032258064, %v1316_v51 }
 0xee5   :  { %3225 = vrsqrt.f32 %v1320_v52  ;;  %vm1324_vm12 = vcmp.eq.f32.partialorder %v1320_v52, inf  ;;  %v1327_v57 = vand.u32 2147483648, %v1320_v52  ;;  %vm1326_vm13 = vcmp.eq.f32.partialorder %v1320_v52, 0.0 }
 0xee6   :  { %v1319_v53 = vpop.xlane.xlu0 %1318 }
 0xee7   :  { %v1321_v32 = vmul.f32 0.032258064, %v1319_v53 }
 0xee9   :  { %3227 = vrsqrt.f32 %v1321_v32  ;;  %vm1331_vm14 = vcmp.eq.f32.partialorder %v1321_v32, inf  ;;  %v1334_v2 = vand.u32 2147483648, %v1321_v32  ;;  %vm1333_vm15 = vcmp.eq.f32.partialorder %v1321_v32, 0.0 }
 0xeef   :  { %v3226_v54 = vpop.eup %3225 }
 0xef0   :  { %v1323_v55 = vmul.f32 %v3226_v54, %v1320_v52 }
 0xef2   :  { %v1325_v58 = vsel %vm1324_vm12, %v1320_v52, %v1323_v55 }
 0xef3   :  { %v3228_v61 = vpop.eup %3227  ;;  %v1328_v5 = vsel %vm1326_vm13, %v1327_v57, %v1325_v58 }
 0xef4   :  { %v1336_v62 = vadd.f32 1e-06, %v1328_v5  ;;  %v1330_v63 = vmul.f32 %v3228_v61, %v1321_v32 }
 0xef6   :  { %3229 = vrcp.f32 %v1336_v62  ;;  %v1332_v4 = vsel %vm1331_vm14, %v1321_v32, %v1330_v63 }
 0xef7   :  { %v1335_v9 = vsel %vm1333_vm15, %v1334_v2, %v1332_v4 }
 0xef8   :  { %v1337_v11 = vadd.f32 1e-06, %v1335_v9  ;;  %v1490_v9 = vsub.s32 6, %v3673_v18 }
 0xefa   :  { %3231 = vrcp.f32 %v1337_v11  ;;  %v1491_v11 = vrot.slane %v3952_v31, %v1490_v9 }
 0xf00   :  { %v3230_v19 = vpop.eup %3229 }
 0xf01   :  { %v1348_v24 = vmul.f32 %v3230_v19, %v1346_v21 }
 0xf03   :  { %v1354_v27 = vadd.f32 %v3943_v22, %v1348_v24 }
 0xf04   :  { %v3232_v25 = vpop.eup %3231 }
 0xf05   :  { %v1349_v26 = vmul.f32 %v3232_v25, %v1347_v23 }
 0xf07   :  { %v1355_v28 = vadd.f32 %v3943_v22, %v1349_v26 }
 0xf09   :  { %v1356_v29 = vpack.c.bf16 %v1355_v28, %v1354_v27 }
 0xf0b   :  { %2977 = vmatmul.mubr.msk.bf16.vlgmr.msra.gmra.mrb[32].mxu0 %vm154_vm0, %v1356_v29 }
 0xf0c   :  { %2990 = vmatprep.mubr.msk.bf16.mxu0 %vm3450_vm1, %v3449_v15  ;;  %2989 = vmatpush3.bf16.xpose.msra.mxu0 %v1508_v8 }
 0xf0d   :  { %3000 = vmatprep.subr.bf16.mxu0 %v3449_v15 }
 0xfde   :  { %v1414_v20 = vpop.f32.mrb[32].mxu0 }
 0xfdf   :  { %v1415_v12 = vadd.f32 %v1414_v20, %v1364_v44  ;;  %v2978_v45 = vpop.f32.mrb[33].mxu0 }
 0xfe0   :  { %v1417_v46 = vpop.f32.mrb[34].mxu0 }
 0xfe1   :  { %v3969_v0 = vpack.c.bf16 %v1415_v12, %v1415_v12  ;;  %v1418_v56 = vadd.f32 %v1417_v46, %v1364_v44  ;;  %v2979_v33 = vpop.f32.mrb[35].mxu0 }
 0xfe3   :  { %v3971_v1 = vpack.c.bf16 %v1418_v56, %v1418_v56  ;;  %2991 = vmatmul.mubr.msk.bf16.vlgmr.msra.gmra.mrb[36].mxu0 %vm306_vm6, %v3969_v0 }
 0xfe4   :  { %3002 = vmatprep.mubr.msk.bf16.mxu0 %vm3450_vm1, %v3449_v15 }
 0xfe5   :  { %2997 = vmatmul.mubr.msk.bf16.vlgmr.msra.gmra.mrb[44].mxu1 %vm306_vm6, %v3971_v1 }
 0xfe6   :  { %3008 = vmatprep.mubr.msk.bf16.mxu1 %vm3450_vm1, %v3449_v15 }
0x10b6   :  { %v1544_v49 = vpop.f32.mrb[36].mxu0 }
0x10b7   :  { %v1596_v51 = vmul.f32 0.35355338, %v1544_v49  ;;  %v2992_v52 = vpop.f32.mrb[37].mxu0 }
0x10b8   :  { %v1547_v53 = vpop.f32.mrb[38].mxu0  ;;  %v1590_v32 = vpop.f32.mrb[44].mxu1 }
0x10b9   :  { %v1597_v55 = vmul.f32 0.35355338, %v1590_v32  ;;  %v2993_v57 = vpop.f32.mrb[39].mxu0  ;;  %v2998_v58 = vpop.f32.mrb[45].mxu1  ;;  %v1598_v61 = vsel %vm3989_vm4, -1e+09, %v1596_v51 }
0x10ba   :  { %v1593_v5 = vpop.f32.mrb[46].mxu1  ;;  %v1600_v62 = vsel %vm306_vm6, %v1598_v61, -inf }
0x10bb   :  { %1601 = vmax.xlane.f32.xlu1 %v1600_v62  ;;  %v2999_v63 = vpop.f32.mrb[47].mxu1  ;;  %v1599_v2 = vsel %vm3993_vm5, -1e+09, %v1597_v55 }
0x10bc   :  { %v1603_v4 = vsel %vm306_vm6, %v1599_v2, -inf }
0x10bd   :  { %1604 = vmax.xlane.f32.xlu0 %v1603_v4 }
0x10cc   :  { %1493 = vrot.lane.b32.xlu1 %v1491_v11, %s3451_s0 }
0x1148   :  { %v1602_v17 = vpop.xlane.xlu1 %1601 }
0x1149   :  { %v1606_v19 = vsub.f32 %v1598_v61, %v1602_v17 }
0x114a   :  { %v1605_v21 = vpop.xlane.xlu0 %1604 }
0x114b   :  { %v1608_v23 = vmul.f32 1.442695, %v1606_v19  ;;  %v1607_v24 = vsub.f32 %v1599_v2, %v1605_v21 }
0x114c   :  { %v1494_v25 = vpop.permute.xlu1 %1493 }
0x114d   :  { %3233 = vpow2.f32 %v1608_v23  ;;  %v1610_v26 = vmul.f32 1.442695, %v1607_v24  ;;  %v1497_v27 = vadd.f32 %v1494_v25, %v1478_v35  ;;  %v1496_v3 = vadd.f32 %v1494_v25, %v3955_v34 }
0x114f   :  { %3235 = vpow2.f32 %v1610_v26  ;;  %v4006_v28 = vpack.c.bf16 %v1497_v27, %v1497_v27  ;;  %v4021_v35 = vpack.c.bf16 %v1496_v3, %v1496_v3 }
0x1151   :  { %1674 = vrot.lane.b32.xlu1 %v4006_v28, %s3452_s11 }
0x1155   :  { %1726 = vrot.lane.b32.xlu1 %v3958_v36, %s3454_s19 }
0x1157   :  { %v3234_v29 = vpop.eup %3233 }
0x1158   :  { %v1612_v30 = vsel %vm306_vm6, %v3234_v29, 0.0 }
0x1159   :  { %v3236_v38 = vpop.eup %3235  ;;  %1778 = vrot.lane.b32.xlu1 %v3960_v41, %s3454_s19  ;;  %1613 = vadd.xlane.f32.xlu0 %v1612_v30 }
0x115a   :  { %v1615_v10 = vsel %vm306_vm6, %v3236_v38, 0.0 }
0x115d   :  { %1723 = vrot.lane.b32.xlu1 %v3969_v0, %s3454_s19  ;;  %1616 = vadd.xlane.f32.xlu0 %v1615_v10 }
0x1161   :  { %1775 = vrot.lane.b32.xlu1 %v3971_v1, %s3454_s19 }
0x1173   :  { %1625 = vrot.lane.b32.xlu0 %v4021_v35, %s3452_s11 }
0x11c3   :  { %v1675_v37 = vpop.permute.xlu1 %1674 }
0x11c4   :  { %v1680_v39 = vsel %vm436_vm9, %v1675_v37, 0 }
0x11c5   :  { %3007 = vmatpush3.bf16.msra.mxu1 %v1680_v39 }
0x11c6   :  { %3018 = vmatprep.subr.bf16.mxu1 %v3449_v15 }
0x11c7   :  { %v1727_v20 = vpop.permute.xlu1 %1726 }
0x11c8   :  { %v1732_v14 = vsel %vm306_vm6, %v1727_v20, 0 }
0x11cb   :  { %v1779_v33 = vpop.permute.xlu1 %1778 }
0x11cc   :  { %v1784_v59 = vsel %vm306_vm6, %v1779_v33, 0 }
0x11cf   :  { %v1724_v47 = vpop.permute.xlu1 %1723 }
0x11d3   :  { %v1776_v7 = vpop.permute.xlu1 %1775 }
0x11e6   :  { %v1614_v8 = vpop.xlane.xlu0 %1613 }
0x11e7   :  { %3237 = vrcp.f32 %v1614_v8 }
0x11ea   :  { %v1617_v43 = vpop.xlane.xlu0 %1616 }
0x11eb   :  { %3239 = vrcp.f32 %v1617_v43 }
0x11ee   :  { %v1626_v44 = vpop.permute.xlu0 %1625 }
0x11ef   :  { %v1631_v12 = vsel %vm436_vm9, %v1626_v44, 0 }
0x11f0   :  { %3001 = vmatpush3.bf16.msra.mxu0 %v1631_v12 }
0x11f1   :  { %v3238_v34 = vpop.eup %3237  ;;  %3012 = vmatprep.subr.bf16.mxu0 %v3449_v15 }
0x11f2   :  { %v1620_v45 = vmul.f32 %v3238_v34, %v3234_v29 }
0x11f4   :  { %v1622_v46 = vpack.c.bf16 %v1620_v45, %v1620_v45 }
0x11f5   :  { %v3240_v56 = vpop.eup %3239 }
0x11f6   :  { %v1621_v6 = vmul.f32 %v3240_v56, %v3236_v38  ;;  %3003 = vmatmul.mubr.msk.bf16.vlgmr.msra.gmra.mrb[40].mxu0 %vm306_vm6, %v1622_v46 }
0x11f7   :  { %3014 = vmatprep.mubr.msk.bf16.mxu0 %vm3450_vm1, %v3449_v15 }
0x11f8   :  { %v1623_v16 = vpack.c.bf16 %v1621_v6, %v1621_v6 }
0x11f9   :  { %3013 = vmatpush3.bf16.xpose.msra.mxu0 %v1732_v14 }
0x11fa   :  { %3009 = vmatmul.mubr.msk.bf16.vlgmr.msra.gmra.mrb[48].mxu1 %vm306_vm6, %v1623_v16  ;;  %3024 = vmatprep.subr.bf16.mxu0 %v3449_v15 }
0x11fb   :  { %3019 = vmatpush3.bf16.xpose.msra.mxu1 %v1784_v59  ;;  %3020 = vmatprep.mubr.msk.bf16.mxu1 %vm3450_vm1, %v3449_v15 }
0x11fc   :  { %3030 = vmatprep.subr.bf16.mxu1 %v3449_v15 }
0x1200   :  { %3015 = vmatmul.mubr.msk.bf16.vlgmr.msra.gmra.mrb[44].mxu0 %vm306_vm6, %v1724_v47 }
0x1201   :  { %3026 = vmatprep.mubr.msk.bf16.mxu0 %vm3450_vm1, %v3449_v15 }
0x1202   :  { %3021 = vmatmul.mubr.msk.bf16.vlgmr.msra.gmra.mrb[52].mxu1 %vm306_vm6, %v1776_v7 }
0x1203   :  { %3032 = vmatprep.mubr.msk.bf16.mxu1 %vm3450_vm1, %v3449_v15 }
0x12c9   :  { %v4045_v48 = vpop.f32.mrb[40].mxu0 }
0x12ca   :  { %v3004_v49 = vpop.f32.mrb[41].mxu0 }
0x12cb   :  { %v1670_v51 = vpop.f32.mrb[42].mxu0 }
0x12cc   :  { %v3005_v52 = vpop.f32.mrb[43].mxu0 }
0x12cd   :  { %v4047_v53 = vpop.f32.mrb[48].mxu1 }
0x12ce   :  { %v3010_v32 = vpop.f32.mrb[49].mxu1 }
0x12cf   :  { %v1719_v55 = vpop.f32.mrb[50].mxu1 }
0x12d0   :  { %v3011_v57 = vpop.f32.mrb[51].mxu1 }
0x12d3   :  { %v1768_v58 = vpop.f32.mrb[44].mxu0 }
0x12d4   :  { %v1826_v61 = vmul.f32 0.35355338, %v1768_v58  ;;  %v3016_v5 = vpop.f32.mrb[45].mxu0 }
0x12d5   :  { %v1771_v62 = vpop.f32.mrb[46].mxu0  ;;  %v1820_v63 = vpop.f32.mrb[52].mxu1 }
0x12d6   :  { %v1827_v2 = vmul.f32 0.35355338, %v1820_v63  ;;  %v3017_v4 = vpop.f32.mrb[47].mxu0  ;;  %v3022_v9 = vpop.f32.mrb[53].mxu1  ;;  %v1828_v11 = vsel %vm3989_vm4, -1e+09, %v1826_v61 }
0x12d7   :  { %v1823_v17 = vpop.f32.mrb[54].mxu1  ;;  %v1830_v19 = vsel %vm306_vm6, %v1828_v11, -inf }
0x12d8   :  { %1831 = vmax.xlane.f32.xlu0 %v1830_v19  ;;  %v3023_v21 = vpop.f32.mrb[55].mxu1  ;;  %v1829_v23 = vsel %vm3993_vm5, -1e+09, %v1827_v2 }
0x12d9   :  { %v1833_v24 = vsel %vm306_vm6, %v1829_v23, -inf }
0x12da   :  { %1834 = vmax.xlane.f32.xlu1 %v1833_v24 }
0x12eb   :  { %1902 = vrot.lane.b32.xlu1 %v4006_v28, %s3453_s2 }
0x12ef   :  { %1952 = vrot.lane.b32.xlu1 %v3958_v36, %s3457_s24 }
0x12f3   :  { %2002 = vrot.lane.b32.xlu1 %v3960_v41, %s3457_s24 }
0x12f7   :  { %2000 = vrot.lane.b32.xlu1 %v3971_v1, %s3457_s24 }
0x1365   :  { %v1832_v25 = vpop.xlane.xlu0 %1831 }
0x1366   :  { %v1836_v26 = vsub.f32 %v1828_v11, %v1832_v25 }
0x1367   :  { %v1835_v27 = vpop.xlane.xlu1 %1834 }
0x1368   :  { %v1838_v29 = vmul.f32 1.442695, %v1836_v26  ;;  %v1837_v30 = vsub.f32 %v1829_v23, %v1835_v27 }
0x136a   :  { %3241 = vpow2.f32 %v1838_v29  ;;  %v1840_v38 = vmul.f32 1.442695, %v1837_v30 }
0x136b   :  { %v1903_v10 = vpop.permute.xlu1 %1902 }
0x136c   :  { %3243 = vpow2.f32 %v1840_v38  ;;  %v1908_v3 = vsel %vm436_vm9, %v1903_v10, 0 }
0x136d   :  { %3031 = vmatpush3.bf16.msra.mxu1 %v1908_v3 }
0x136e   :  { %3042 = vmatprep.subr.bf16.mxu1 %v3449_v15 }
0x136f   :  { %v1953_v46 = vpop.permute.xlu1 %1952 }
0x1370   :  { %v1958_v59 = vsel %vm306_vm6, %v1953_v46, 0 }
0x1373   :  { %v2003_v16 = vpop.permute.xlu1 %2002 }
0x1374   :  { %v3242_v37 = vpop.eup %3241  ;;  %v2008_v7 = vsel %vm306_vm6, %v2003_v16, 0 }
0x1375   :  { %v1842_v39 = vsel %vm306_vm6, %v3242_v37, 0.0 }
0x1376   :  { %v3244_v8 = vpop.eup %3243  ;;  %1843 = vadd.xlane.f32.xlu0 %v1842_v39 }
0x1377   :  { %v1845_v43 = vsel %vm306_vm6, %v3244_v8, 0.0  ;;  %v2001_v51 = vpop.permute.xlu1 %2000 }
0x137a   :  { %1846 = vadd.xlane.f32.xlu0 %v1845_v43 }
0x1390   :  { %1854 = vrot.lane.b32.xlu0 %v4021_v35, %s3453_s2 }
0x1394   :  { %1950 = vrot.lane.b32.xlu0 %v3969_v0, %s3457_s24 }
0x1403   :  { %v1844_v44 = vpop.xlane.xlu0 %1843 }
0x1404   :  { %3245 = vrcp.f32 %v1844_v44 }
0x1407   :  { %v1847_v20 = vpop.xlane.xlu0 %1846 }
0x1408   :  { %3247 = vrcp.f32 %v1847_v20 }
0x140b   :  { %v1855_v12 = vpop.permute.xlu0 %1854 }
0x140c   :  { %v1860_v34 = vsel %vm436_vm9, %v1855_v12, 0 }
0x140d   :  { %3025 = vmatpush3.bf16.msra.mxu0 %v1860_v34 }
0x140e   :  { %v3246_v45 = vpop.eup %3245  ;;  %3036 = vmatprep.subr.bf16.mxu0 %v3449_v15 }
0x140f   :  { %v1850_v56 = vmul.f32 %v3246_v45, %v3242_v37  ;;  %v1951_v49 = vpop.permute.xlu0 %1950 }
0x1411   :  { %v1852_v33 = vpack.c.bf16 %v1850_v56, %v1850_v56 }
0x1412   :  { %v3248_v6 = vpop.eup %3247 }
0x1413   :  { %v1851_v14 = vmul.f32 %v3248_v6, %v3244_v8  ;;  %3027 = vmatmul.mubr.msk.bf16.vlgmr.msra.gmra.mrb[48].mxu0 %vm306_vm6, %v1852_v33 }
0x1414   :  { %3038 = vmatprep.mubr.msk.bf16.mxu0 %vm3450_vm1, %v3449_v15 }
0x1415   :  { %v1853_v47 = vpack.c.bf16 %v1851_v14, %v1851_v14 }
0x1416   :  { %3037 = vmatpush3.bf16.xpose.msra.mxu0 %v1958_v59 }
0x1417   :  { %3033 = vmatmul.mubr.msk.bf16.vlgmr.msra.gmra.mrb[56].mxu1 %vm306_vm6, %v1853_v47  ;;  %3048 = vmatprep.subr.bf16.mxu0 %v3449_v15 }
0x1418   :  { %3043 = vmatpush3.bf16.xpose.msra.mxu1 %v2008_v7  ;;  %3044 = vmatprep.mubr.msk.bf16.mxu1 %vm3450_vm1, %v3449_v15 }
0x1419   :  { %3054 = vmatprep.subr.bf16.mxu1 %v3449_v15 }
0x141d   :  { %3039 = vmatmul.mubr.msk.bf16.vlgmr.msra.gmra.mrb[52].mxu0 %vm306_vm6, %v1951_v49 }
0x141e   :  { %3050 = vmatprep.mubr.msk.bf16.mxu0 %vm3450_vm1, %v3449_v15 }
0x141f   :  { %3045 = vmatmul.mubr.msk.bf16.vlgmr.msra.gmra.mrb[60].mxu1 %vm306_vm6, %v2001_v51 }
0x1420   :  { %3056 = vmatprep.mubr.msk.bf16.mxu1 %vm3450_vm1, %v3449_v15 }
0x14e6   :  { %v4089_v52 = vpop.f32.mrb[48].mxu0 }
0x14e7   :  { %v3028_v32 = vpop.f32.mrb[49].mxu0 }
0x14e8   :  { %v1899_v55 = vpop.f32.mrb[50].mxu0 }
0x14e9   :  { %v3029_v57 = vpop.f32.mrb[51].mxu0 }
0x14ea   :  { %v4091_v58 = vpop.f32.mrb[56].mxu1 }
0x14eb   :  { %v3154_v61 = vpack.i.bf16 %v4091_v58, %v4089_v52  ;;  %v3034_v5 = vpop.f32.mrb[57].mxu1 }
0x14ec   :  { %v1947_v62 = vpop.f32.mrb[58].mxu1 }
0x14ed   :  { %v3035_v63 = vpop.f32.mrb[59].mxu1 }
0x14f0   :  { %v1994_v2 = vpop.f32.mrb[52].mxu0 }
0x14f1   :  { %v2050_v4 = vmul.f32 0.35355338, %v1994_v2  ;;  %v3040_v9 = vpop.f32.mrb[53].mxu0 }
0x14f2   :  { %v1997_v11 = vpop.f32.mrb[54].mxu0  ;;  %v2044_v17 = vpop.f32.mrb[60].mxu1 }
0x14f3   :  { %v2051_v19 = vmul.f32 0.35355338, %v2044_v17  ;;  %v3041_v21 = vpop.f32.mrb[55].mxu0  ;;  %v3046_v23 = vpop.f32.mrb[61].mxu1  ;;  %v2052_v24 = vsel %vm3989_vm4, -1e+09, %v2050_v4 }
0x14f4   :  { %v2047_v25 = vpop.f32.mrb[62].mxu1  ;;  %v2054_v26 = vsel %vm306_vm6, %v2052_v24, -inf }
0x14f5   :  { %2055 = vmax.xlane.f32.xlu0 %v2054_v26  ;;  %v3047_v27 = vpop.f32.mrb[63].mxu1  ;;  %v2053_v29 = vsel %vm3993_vm5, -1e+09, %v2051_v19 }
0x14f6   :  { %v2057_v30 = vsel %vm306_vm6, %v2053_v29, -inf }
0x14f7   :  { %2058 = vmax.xlane.f32.xlu1 %v2057_v30 }
0x1508   :  { %2126 = vrot.lane.b32.xlu1 %v4006_v28, %s3456_s23 }
0x150c   :  { %2176 = vrot.lane.b32.xlu1 %v3958_v36, %s3460_s18 }
0x1510   :  { %2226 = vrot.lane.b32.xlu1 %v3960_v41, %s3460_s18 }
0x1514   :  { %2224 = vrot.lane.b32.xlu1 %v3971_v1, %s3460_s18 }
0x1582   :  { %v2056_v38 = vpop.xlane.xlu0 %2055 }
0x1583   :  { %v2060_v10 = vsub.f32 %v2052_v24, %v2056_v38 }
0x1584   :  { %v2059_v3 = vpop.xlane.xlu1 %2058 }
0x1585   :  { %v2062_v37 = vmul.f32 1.442695, %v2060_v10  ;;  %v2061_v39 = vsub.f32 %v2053_v29, %v2059_v3 }
0x1587   :  { %3249 = vpow2.f32 %v2062_v37  ;;  %v2064_v8 = vmul.f32 1.442695, %v2061_v39 }
0x1588   :  { %v2127_v43 = vpop.permute.xlu1 %2126 }
0x1589   :  { %3251 = vpow2.f32 %v2064_v8  ;;  %v2132_v44 = vsel %vm436_vm9, %v2127_v43, 0 }
0x158a   :  { %3055 = vmatpush3.bf16.msra.mxu1 %v2132_v44 }
0x158b   :  { %3066 = vmatprep.subr.bf16.mxu1 %v3449_v15 }
0x158c   :  { %v2177_v33 = vpop.permute.xlu1 %2176 }
0x1590   :  { %v2227_v47 = vpop.permute.xlu1 %2226 }
0x1591   :  { %v3250_v36 = vpop.eup %3249  ;;  %v2232_v49 = vsel %vm306_vm6, %v2227_v47, 0 }
0x1592   :  { %v2066_v41 = vsel %vm306_vm6, %v3250_v36, 0.0 }
0x1593   :  { %v3252_v20 = vpop.eup %3251  ;;  %2067 = vadd.xlane.f32.xlu0 %v2066_v41 }
0x1594   :  { %v2069_v1 = vsel %vm306_vm6, %v3252_v20, 0.0  ;;  %v2225_v32 = vpop.permute.xlu1 %2224 }
0x1597   :  { %2070 = vadd.xlane.f32.xlu0 %v2069_v1 }
0x15ad   :  { %2078 = vrot.lane.b32.xlu0 %v4021_v35, %s3456_s23 }
0x15b1   :  { %2174 = vrot.lane.b32.xlu0 %v3969_v0, %s3460_s18  ;;  %v2182_v0 = vsel %vm306_vm6, %v2177_v33, 0 }
0x1620   :  { %v2068_v12 = vpop.xlane.xlu0 %2067 }
0x1621   :  { %3253 = vrcp.f32 %v2068_v12 }
0x1624   :  { %v2071_v34 = vpop.xlane.xlu0 %2070 }
0x1625   :  { %3255 = vrcp.f32 %v2071_v34 }
0x1628   :  { %v2079_v45 = vpop.permute.xlu0 %2078 }
0x1629   :  { %v2084_v46 = vsel %vm436_vm9, %v2079_v45, 0 }
0x162a   :  { %3049 = vmatpush3.bf16.msra.mxu0 %v2084_v46 }
0x162b   :  { %v3254_v56 = vpop.eup %3253  ;;  %3060 = vmatprep.subr.bf16.mxu0 %v3449_v15 }
0x162c   :  { %v2074_v6 = vmul.f32 %v3254_v56, %v3250_v36  ;;  %v2175_v51 = vpop.permute.xlu0 %2174 }
0x162e   :  { %v2076_v14 = vpack.c.bf16 %v2074_v6, %v2074_v6 }
0x162f   :  { %v3256_v16 = vpop.eup %3255 }
0x1630   :  { %v2075_v59 = vmul.f32 %v3256_v16, %v3252_v20  ;;  %3051 = vmatmul.mubr.msk.bf16.vlgmr.msra.gmra.mrb[56].mxu0 %vm306_vm6, %v2076_v14  ;;  %v3177_v14 = vld [vmem:[#allocation10] sm:$0xff]   ;;  %v3178_v16 = vld [vmem:[#allocation10 + $0x8] sm:$0xff]  }
0x1631   :  { %3062 = vmatprep.mubr.msk.bf16.mxu0 %vm3450_vm1, %v3449_v15 }
0x1632   :  { %v2077_v7 = vpack.c.bf16 %v2075_v59, %v2075_v59 }
0x1633   :  { %3061 = vmatpush3.bf16.xpose.msra.mxu0 %v2182_v0 }
0x1634   :  { %3057 = vmatmul.mubr.msk.bf16.vlgmr.msra.gmra.mrb[64].mxu1 %vm306_vm6, %v2077_v7  ;;  %3072 = vmatprep.subr.bf16.mxu0 %v3449_v15 }
0x1635   :  { %3067 = vmatpush3.bf16.xpose.msra.mxu1 %v2232_v49  ;;  %3068 = vmatprep.mubr.msk.bf16.mxu1 %vm3450_vm1, %v3449_v15 }
0x1636   :  { %3078 = vmatprep.subr.bf16.mxu1 %v3449_v15 }
0x163a   :  { %3063 = vmatmul.mubr.msk.bf16.vlgmr.msra.gmra.mrb[60].mxu0 %vm306_vm6, %v2175_v51 }
0x163b   :  { %3074 = vmatprep.mubr.msk.bf16.mxu0 %vm3450_vm1, %v3449_v15 }
0x163c   :  { %3069 = vmatmul.mubr.msk.bf16.vlgmr.msra.gmra.mrb[68].mxu1 %vm306_vm6, %v2225_v32 }
0x163d   :  { %3080 = vmatprep.mubr.msk.bf16.mxu1 %vm3450_vm1, %v3449_v15 }
0x1703   :  { %v2120_v55 = vpop.f32.mrb[56].mxu0 }
0x1704   :  { %v3052_v57 = vpop.f32.mrb[57].mxu0 }
0x1705   :  { %v2123_v5 = vpop.f32.mrb[58].mxu0 }
0x1706   :  { %v3053_v62 = vpop.f32.mrb[59].mxu0 }
0x1707   :  { %v2168_v63 = vpop.f32.mrb[64].mxu1 }
0x1708   :  { %v3159_v2 = vpack.i.bf16 %v2168_v63, %v2120_v55  ;;  %v3058_v4 = vpop.f32.mrb[65].mxu1 }
0x1709   :  { %v2171_v9 = vpop.f32.mrb[66].mxu1 }
0x170a   :  { %v3059_v11 = vpop.f32.mrb[67].mxu1 }
0x170d   :  { %v2218_v17 = vpop.f32.mrb[60].mxu0 }
0x170e   :  { %v2274_v19 = vmul.f32 0.35355338, %v2218_v17  ;;  %v3064_v21 = vpop.f32.mrb[61].mxu0 }
0x170f   :  { %v2221_v23 = vpop.f32.mrb[62].mxu0  ;;  %v2268_v24 = vpop.f32.mrb[68].mxu1 }
0x1710   :  { %v2275_v25 = vmul.f32 0.35355338, %v2268_v24  ;;  %v3065_v26 = vpop.f32.mrb[63].mxu0  ;;  %v3070_v27 = vpop.f32.mrb[69].mxu1  ;;  %v2276_v29 = vsel %vm3989_vm4, -1e+09, %v2274_v19 }
0x1711   :  { %v2271_v30 = vpop.f32.mrb[70].mxu1  ;;  %v2278_v38 = vsel %vm306_vm6, %v2276_v29, -inf }
0x1712   :  { %2279 = vmax.xlane.f32.xlu0 %v2278_v38  ;;  %v3071_v10 = vpop.f32.mrb[71].mxu1  ;;  %v2277_v3 = vsel %vm3993_vm5, -1e+09, %v2275_v25 }
0x1713   :  { %v2281_v37 = vsel %vm306_vm6, %v2277_v3, -inf }
0x1714   :  { %2282 = vmax.xlane.f32.xlu1 %v2281_v37 }
0x1725   :  { %2350 = vrot.lane.b32.xlu1 %v4006_v28, %s3459_s4 }
0x1729   :  { %3155 = vrot.lane.b32.xlu1 %v3154_v61, %s3448_s21 }
0x172d   :  { %3160 = vrot.lane.b32.xlu1 %v3159_v2, %s3462_s30 }
0x179f   :  { %v2280_v50 = vpop.xlane.xlu0 %2279 }
0x17a0   :  { %v2284_v39 = vsub.f32 %v2276_v29, %v2280_v50 }
0x17a1   :  { %v2283_v8 = vpop.xlane.xlu1 %2282 }
0x17a2   :  { %v2286_v43 = vmul.f32 1.442695, %v2284_v39  ;;  %v2285_v44 = vsub.f32 %v2277_v3, %v2283_v8 }
0x17a4   :  { %3257 = vpow2.f32 %v2286_v43  ;;  %v2288_v54 = vmul.f32 1.442695, %v2285_v44 }
0x17a5   :  { %v2351_v36 = vpop.permute.xlu1 %2350 }
0x17a6   :  { %3259 = vpow2.f32 %v2288_v54  ;;  %v2356_v41 = vsel %vm436_vm9, %v2351_v36, 0 }
0x17a7   :  { %3079 = vmatpush3.bf16.msra.mxu1 %v2356_v41 }
0x17a8   :  { %3092 = vmatprep.subr.bf16.mxu1 %v3449_v15 }
0x17a9   :  { %v3156_v5 = vpop.permute.xlu1 %3155 }
0x17aa   :  { %v3158_v63 = vunpack.i.h.bf16 %v3156_v5  ;;  %v3157_v2 = vunpack.i.l.bf16 %v3156_v5 }
0x17ac   :  { %v2423_v17 = vsel %vm306_vm6, %v4047_v53, %v3158_v63  ;;  %v2422_v19 = vsel %vm306_vm6, %v4045_v48, %v3157_v2  ;;  %v2435_v53 = vsub.s32 7, %v3673_v18 }
0x17ad   :  { %v3161_v62 = vpop.permute.xlu1 %3160 }
0x17ae   :  { %v3258_v28 = vpop.eup %3257  ;;  %v3163_v4 = vunpack.i.h.bf16 %v3161_v62  ;;  %v3162_v9 = vunpack.i.l.bf16 %v3161_v62  ;;  %v2436_v48 = vrot.slane %v3952_v31, %v2435_v53 }
0x17af   :  { %v2290_v52 = vsel %vm306_vm6, %v3258_v28, 0.0 }
0x17b0   :  { %v3260_v58 = vpop.eup %3259  ;;  %2291 = vadd.xlane.f32.xlu0 %v2290_v52  ;;  %v2424_v24 = vsel %vm1229_vm10, %v2422_v19, %v3162_v9  ;;  %v2425_v25 = vsel %vm1229_vm10, %v2423_v17, %v3163_v4  ;;  %v3183_v17 = vld [vmem:[%s4252_s10 + $0x10] sm:$0xff]   ;;  %v2764_v19 = vld [vmem:[%s4254_s12] ss:$0 sm:$0xff] }
0x17b1   :  { %v2293_v61 = vsel %vm306_vm6, %v3260_v58, 0.0 }
0x17b4   :  { %2294 = vadd.xlane.f32.xlu0 %v2293_v61  ;;  %v3179_v61 = vld [vmem:[%s4251_s9] sm:$0xff]  }
0x17ca   :  { %2302 = vrot.lane.b32.xlu0 %v4021_v35, %s3459_s4 }
0x183d   :  { %v2292_v20 = vpop.xlane.xlu0 %2291 }
0x183e   :  { %3261 = vrcp.f32 %v2292_v20  ;;  %v3180_v20 = vld [vmem:[%s4251_s9 + $0x8] sm:$0xff]  }
0x1841   :  { %v2295_v1 = vpop.xlane.xlu0 %2294 }
0x1842   :  { %3263 = vrcp.f32 %v2295_v1  ;;  %v3181_v1 = vld [vmem:[%s4252_s10] sm:$0xff]  }
0x1845   :  { %v2303_v12 = vpop.permute.xlu0 %2302 }
0x1846   :  { %v2308_v34 = vsel %vm436_vm9, %v2303_v12, 0  ;;  %v3182_v12 = vld [vmem:[%s4252_s10 + $0x8] sm:$0xff]   ;;  %vm2648_vm9 = vcmask 523264  }
0x1847   :  { %3073 = vmatpush3.bf16.msra.mxu0 %v2308_v34 }
0x1848   :  { %v3262_v45 = vpop.eup %3261  ;;  %3084 = vmatprep.subr.bf16.mxu0 %v3449_v15 }
0x1849   :  { %v2298_v46 = vmul.f32 %v3262_v45, %v3258_v28 }
0x184b   :  { %v2300_v56 = vpack.c.bf16 %v2298_v46, %v2298_v46 }
0x184c   :  { %v3264_v33 = vpop.eup %3263 }
0x184d   :  { %v2299_v6 = vmul.f32 %v3264_v33, %v3260_v58  ;;  %3075 = vmatmul.mubr.msk.bf16.vlgmr.msra.gmra.mrb[64].mxu0 %vm306_vm6, %v2300_v56 }
0x184e   :  { %3088 = vmatprep.mubr.msk.bf16.mxu0 %vm3450_vm1, %v3449_v15  ;;  %3085 = vmatpush3.bf16.msra.mxu0 %v3177_v14 }
0x184f   :  { %v2301_v35 = vpack.c.bf16 %v2299_v6, %v2299_v6  ;;  %3086 = vmatprep.subr.bf16.mxu0 %v3449_v15 }
0x1851   :  { %3081 = vmatmul.mubr.msk.bf16.vlgmr.msra.gmra.mrb[72].mxu1 %vm306_vm6, %v2301_v35 }
0x1852   :  { %3096 = vmatprep.mubr.msk.bf16.mxu1 %vm3450_vm1, %v3449_v15  ;;  %3087 = vmatpush3.bf16.msra.mxu0 %v3178_v16 }
0x1853   :  { %3100 = vmatprep.subr.bf16.mxu0 %v3449_v15  ;;  %3093 = vmatpush3.bf16.msra.mxu1 %v3179_v61 }
0x1854   :  { %3094 = vmatprep.subr.bf16.mxu1 %v3449_v15 }
0x1857   :  { %3095 = vmatpush3.bf16.msra.mxu1 %v3180_v20 }
0x1920   :  { %v2344_v59 = vpop.f32.mrb[64].mxu0 }
0x1921   :  { %v3076_v47 = vpop.f32.mrb[65].mxu0 }
0x1922   :  { %v2347_v0 = vpop.f32.mrb[66].mxu0 }
0x1923   :  { %v3077_v7 = vpop.f32.mrb[67].mxu0 }
0x1924   :  { %v2392_v49 = vpop.f32.mrb[72].mxu1 }
0x1925   :  { %v3164_v51 = vpack.i.bf16 %v2392_v49, %v2344_v59  ;;  %v3082_v32 = vpop.f32.mrb[73].mxu1 }
0x1926   :  { %v2395_v55 = vpop.f32.mrb[74].mxu1 }
0x1927   :  { %3165 = vrot.lane.b32.xlu0 %v3164_v51, %s3463_s7  ;;  %v3083_v57 = vpop.f32.mrb[75].mxu1 }
0x1999   :  { %v3166_v11 = vpop.permute.xlu0 %3165 }
0x199a   :  { %v3168_v21 = vunpack.i.h.bf16 %v3166_v11  ;;  %v3167_v23 = vunpack.i.l.bf16 %v3166_v11 }
0x199c   :  { %v2427_v26 = vsel %vm1232_vm11, %v2425_v25, %v3168_v21  ;;  %v2426_v27 = vsel %vm1232_vm11, %v2424_v24, %v3167_v23 }
0x199d   :  { %v2428_v29 = vpack.c.bf16 %v2427_v26, %v2426_v27 }
0x199f   :  { %3089 = vmatmul.mubr.msk.bf16.vlgmr.msra.gmra.mrb[68].mxu0 %vm154_vm0, %v2428_v29 }
0x19a0   :  { %3108 = vmatprep.mubr.msk.bf16.mxu0 %vm3450_vm1, %v3449_v15  ;;  %3101 = vmatpush3.bf16.msra.mxu0 %v3181_v1 }
0x19a1   :  { %3102 = vmatprep.subr.bf16.mxu0 %v3449_v15 }
0x19a4   :  { %3103 = vmatpush3.bf16.msra.mxu0 %v3182_v12 }
0x19a5   :  { %3104 = vmatprep.subr.bf16.mxu0 %v3449_v15 }
0x19a8   :  { %3105 = vmatpush3.bf16.msra.mxu0 %v3183_v17 }
0x19a9   :  { %3106 = vmatprep.subr.bf16.mxu0 %v3449_v15  ;;  %v3274_v15 = vld [vmem:[#allocation11 + $0x8] sm:$0x1f] }
0x1a72   :  { %v2486_v30 = vpop.f32.mrb[68].mxu0 }
0x1a73   :  { %v2487_v38 = vadd.f32 %v2486_v30, %v2436_v48  ;;  %v3090_v10 = vpop.f32.mrb[69].mxu0 }
0x1a74   :  { %v2489_v3 = vpop.f32.mrb[70].mxu0 }
0x1a75   :  { %v4179_v37 = vadd.f32 %v2487_v38, %v3909_v40  ;;  %v2490_v50 = vadd.f32 %v2489_v3, %v2436_v48  ;;  %v3091_v39 = vpop.f32.mrb[71].mxu0  ;;  %v2623_v48 = vrot.slane %v3274_v15, %v3699_v60 }
0x1a77   :  { %v4182_v8 = vadd.f32 %v2490_v50, %v3912_v42  ;;  %v2495_v43 = vsel %vm154_vm0, %v4179_v37, 0.0 }
0x1a78   :  { %2496 = vadd.xlane.f32.xlu1 %v2495_v43 }
0x1a79   :  { %v2498_v18 = vsel %vm154_vm0, %v4182_v8, 0.0 }
0x1a7a   :  { %2499 = vadd.xlane.f32.xlu0 %v2498_v18 }
0x1b05   :  { %v2497_v31 = vpop.xlane.xlu1 %2496 }
0x1b06   :  { %v2501_v44 = vmul.f32 0.03125, %v2497_v31 }
0x1b07   :  { %v2500_v54 = vpop.xlane.xlu0 %2499 }
0x1b08   :  { %v2503_v36 = vsub.f32 %v4179_v37, %v2501_v44  ;;  %v2502_v40 = vmul.f32 0.03125, %v2500_v54 }
0x1b0a   :  { %v2504_v41 = vsub.f32 %v4182_v8, %v2502_v40  ;;  %v2505_v28 = vmul.f32 %v2503_v36, %v2503_v36  ;;  %v2535_v57 = vmul.f32 %v2503_v36, %v3938_v13 }
0x1b0c   :  { %v2507_v42 = vsel %vm154_vm0, %v2505_v28, 0.0  ;;  %v2506_v52 = vmul.f32 %v2504_v41, %v2504_v41  ;;  %v2536_v5 = vmul.f32 %v2504_v41, %v3938_v13  ;;  %v3184_v13 = vld [vmem:[%s4252_s10 + $0x18] sm:$0xff]   ;;  %s3465_s10 = smov [#allocation13]  }
0x1b0d   :  { %2508 = vadd.xlane.f32.xlu0 %v2507_v42  ;;  %3107 = vmatpush3.bf16.msra.mxu0 %v3184_v13  ;;  %s2702_s12 = sshll.u32 %s3465_s10, 4  ;;  %s2703_s12 = int_to_ptr.vmem [resolvable:$true] %s2702_s12 }
0x1b0e   :  { %v2510_v58 = vsel %vm154_vm0, %v2506_v52, 0.0  ;;  %s3407_s18 = scalar_lea.vmem %s2703_s12, 256  ;;  %p3412_p7 = scmp.lt.s32.totalorder %s2703_s12, %s2703_s12 }
0x1b0f   :  { %p3408_p6 = scmp.ne.s32.totalorder %s2703_s12, %s3407_s18  ;;  %p3413_p8 = scmp.lt.s32.totalorder %s3407_s18, %s3407_s18 }
0x1b11   :  { %2511 = vadd.xlane.f32.xlu0 %v2510_v58  ;;  %p3414_p9 = por %p3413_p8, %p3412_p7 }
0x1b13   :  { %p3415_p10 = pnand %p3414_p9, %p3408_p6 }
0x1b9a   :  { %v2509_v34 = vpop.xlane.xlu0 %2508 }
0x1b9b   :  { %v2513_v45 = vmul.f32 0.032258064, %v2509_v34 }
0x1b9d   :  { %3265 = vrsqrt.f32 %v2513_v45  ;;  %vm2517_vm1 = vcmp.eq.f32.partialorder %v2513_v45, inf  ;;  %v2520_v35 = vand.u32 2147483648, %v2513_v45  ;;  %vm2519_vm6 = vcmp.eq.f32.partialorder %v2513_v45, 0.0 }
0x1b9e   :  { %v2512_v46 = vpop.xlane.xlu0 %2511 }
0x1b9f   :  { %v2514_v56 = vmul.f32 0.032258064, %v2512_v46 }
0x1ba1   :  { %3267 = vrsqrt.f32 %v2514_v56  ;;  %vm2524_vm7 = vcmp.eq.f32.partialorder %v2514_v56, inf  ;;  %v2527_v7 = vand.u32 2147483648, %v2514_v56  ;;  %vm2526_vm8 = vcmp.eq.f32.partialorder %v2514_v56, 0.0 }
0x1ba7   :  { %v3266_v33 = vpop.eup %3265 }
0x1ba8   :  { %v2516_v6 = vmul.f32 %v3266_v33, %v2513_v45 }
0x1baa   :  { %v2518_v14 = vsel %vm2517_vm1, %v2513_v45, %v2516_v6 }
0x1bab   :  { %v3268_v16 = vpop.eup %3267  ;;  %v2521_v59 = vsel %vm2519_vm6, %v2520_v35, %v2518_v14 }
0x1bac   :  { %v2529_v47 = vadd.f32 1e-06, %v2521_v59  ;;  %v2523_v0 = vmul.f32 %v3268_v16, %v2514_v56 }
0x1bae   :  { %3269 = vrcp.f32 %v2529_v47  ;;  %v2525_v49 = vsel %vm2524_vm7, %v2514_v56, %v2523_v0 }
0x1baf   :  { %v2528_v51 = vsel %vm2526_vm8, %v2527_v7, %v2525_v49 }
0x1bb0   :  { %v2530_v32 = vadd.f32 1e-06, %v2528_v51 }
0x1bb2   :  { %3271 = vrcp.f32 %v2530_v32 }
0x1bb8   :  { %v3270_v55 = vpop.eup %3269 }
0x1bb9   :  { %v2537_v62 = vmul.f32 %v3270_v55, %v2535_v57 }
0x1bbb   :  { %v2539_v4 = vadd.f32 %v2537_v62, %v3943_v22 }
0x1bbc   :  { %v3272_v63 = vpop.eup %3271 }
0x1bbd   :  { %v2538_v2 = vmul.f32 %v3272_v63, %v2536_v5 }
0x1bbf   :  { %v2540_v9 = vadd.f32 %v2538_v2, %v3943_v22 }
0x1bc1   :  { %v2541_v11 = vpack.c.bf16 %v2540_v9, %v2539_v4 }
0x1bc3   :  { %3097 = vmatmul.mubr.msk.bf16.vlgmr.msra.gmra.mrb[76].mxu1 %vm154_vm0, %v2541_v11 }
0x1c96   :  { %v2602_v22 = vpop.f32.mrb[76].mxu1 }
0x1c97   :  { %v2603_v21 = vadd.f32 %v2764_v19, %v2602_v22  ;;  %v3098_v23 = vpop.f32.mrb[77].mxu1 }
0x1c98   :  { %v2605_v24 = vpop.f32.mrb[78].mxu1 }
0x1c99   :  { %v2606_v25 = vadd.f32 %v2764_v19, %v2605_v24  ;;  %v3099_v26 = vpop.f32.mrb[79].mxu1  ;;  %v2609_v27 = vmax.f32 %v2603_v21, 0.0 }
0x1c9b   :  { %v2610_v29 = vmax.f32 %v2606_v25, 0.0 }
0x1c9d   :  { %v2611_v53 = vpack.c.bf16 %v2610_v29, %v2609_v27 }
0x1c9f   :  { %3109 = vmatmul.mubr.msk.bf16.vlgmr.msra.gmra.mrb[72].mxu0 %vm2648_vm9, %v2611_v53 }
0x1d72   :  { %v2686_v30 = vpop.f32.mrb[72].mxu0 }
0x1d73   :  { %v2687_v38 = vadd.f32 %v2686_v30, %v2623_v48  ;;  %v3110_v10 = vpop.f32.mrb[73].mxu0 }
0x1d74   :  { %v2689_v3 = vpop.f32.mrb[74].mxu0 }
0x1d75   :  { %v2693_v50 = vadd.f32 %v2687_v38, %v4179_v37  ;;  %v2690_v39 = vadd.f32 %v2689_v3, %v2623_v48  ;;  %v3111_v43 = vpop.f32.mrb[75].mxu0 }
0x1d77   :  { %2695 = vst.msk [vmem:[#allocation13] sm:$0xff] %vm154_vm0, %v2693_v50  ;;  %v2694_v18 = vadd.f32 %v2690_v39, %v4182_v8 }
0x1d79   :  { %2696 = vst.msk [vmem:[#allocation13 + $0x8] sm:$0xff] %vm154_vm0, %v2694_v18 }
0x1d7a   :  { %3418 = shalt.err (!%p3415_p10)
}
0x1d7b   :  { %s3419_s7 = scalar_lea.hbm %s4255_s13, 256 }
0x1d7c   :  { %p3420_p11 = scmp.ne.s32.totalorder %s4255_s13, %s3419_s7  ;;  %p3423_p12 = scmp.lt.u32.totalorder %s3419_s7, %s4255_s13 }
0x1d7e   :  { %p3425_p13 = pnand %p3423_p12, %p3420_p11 }
0x1d80   :  { %3428 = shalt.err (!%p3425_p13)
}
0x1d81   :  { %2708 = dma.vmem_to_hbm [thread:$0]  %s2703_s12, 256, %s4255_s13, [#allocation4], %s3447_s8, %s3447_s8, %s3448_s21  }
0x1d82   :  { %3437 = dma.done.wait [#allocation4], 256  }
0x1d83   :  { %3438 = vsyncadd [#allocation4], 4294967040 }
0x1d84   :  { %2712 = vsyncpa [#allocation3], 1 }
0x1d85   :  { %2713 = vsyncpa [#allocation6], 1 }
0x1d86   :  { %2714 = vsyncpa [#allocation9], 1 }
0x1d87   :  { %2715 = vsyncpa [#allocation12], 1 }
0x1d88   :  { %2716 = vsyncpa [#allocation4], 1 }

</bundles_post_ra>
